<compile_context>
chip_gen: v6e
topology: v6e:2x2x1
jax: 0.10.0
libtpu: 0.0.40
codegen_flags: <defaults>
</compile_context>

<pallas_src>
import functools

import jax
import jax.numpy as jnp
from jax.experimental import pallas as pl
from jax.experimental.pallas import tpu as pltpu

HIDDEN = 256


def _mlp_kernel(x_ref, w1_ref, b1_ref, w2_ref, b2_ref, w3_ref, b3_ref,
                w4_ref, b4_ref, o_ref):
    # Whole hot path (4 matmuls + biases + 3 ReLUs) fused over one batch tile.
    # MXU: bf16 x bf16 -> f32 accumulate.  VPU: bias-add / ReLU in f32.
    h = jnp.dot(x_ref[...], w1_ref[...], preferred_element_type=jnp.float32)
    h = jnp.maximum(h + b1_ref[...], 0.0)
    h = jnp.dot(h.astype(jnp.bfloat16), w2_ref[...],
                preferred_element_type=jnp.float32)
    h = jnp.maximum(h + b2_ref[...], 0.0)
    h = jnp.dot(h.astype(jnp.bfloat16), w3_ref[...],
                preferred_element_type=jnp.float32)
    h = jnp.maximum(h + b3_ref[...], 0.0)
    out = jnp.dot(h.astype(jnp.bfloat16), w4_ref[...],
                  preferred_element_type=jnp.float32) + b4_ref[...]
    o_ref[...] = out.astype(o_ref.dtype)


def _round_up(n, m):
    return ((n + m - 1) // m) * m


def _choose_batch_tile(batch):
    """Small B -> one grid step of round_up(B, 16) rows (minimal padding, no
    extra per-step overhead).  Large B -> 512-row tiles, which keeps >= 2 grid
    steps so the 'parallel' batch axis can be split across v7x's 2 TCs."""
    b16 = _round_up(max(batch, 1), 16)
    if b16 <= 512:
        return b16
    return 512


def prepare_params(params):
    """One-time weight/bias layout prep (call OUTSIDE the hot loop).

    Casts weights to bf16 (MXU operand dtype), keeps biases f32, and
    zero-pads the input-feature dim of w1 and the output-feature dim of
    w4/b4 to multiples of 128 for lane-dense loads/stores.

    Returns (prepped_dict, d_out) where d_out is the true output width.
    """
    d_in = params["w1"].shape[0]
    d_out = params["w4"].shape[1]
    d_in_pad = _round_up(d_in, 128)
    d_out_pad = _round_up(d_out, 128)

    prepped = {
        "w1": jnp.pad(params["w1"].astype(jnp.bfloat16),
                      ((0, d_in_pad - d_in), (0, 0))),
        "b1": params["b1"].astype(jnp.float32),
        "w2": params["w2"].astype(jnp.bfloat16),
        "b2": params["b2"].astype(jnp.float32),
        "w3": params["w3"].astype(jnp.bfloat16),
        "b3": params["b3"].astype(jnp.float32),
        "w4": jnp.pad(params["w4"].astype(jnp.bfloat16),
                      ((0, 0), (0, d_out_pad - d_out))),
        "b4": jnp.pad(params["b4"].astype(jnp.float32),
                      ((0, 0), (0, d_out_pad - d_out))),
    }
    return jax.tree_util.tree_map(jax.device_put, prepped), d_out


@functools.partial(jax.jit, static_argnames=("d_out",))
def lfh_model_forward(x, prepped, *, d_out):
    """x: (B, input_size) float32.  prepped: output of prepare_params().

    Matches PyTorch nn.Linear stack: y = x @ W + b (W stored (in, out),
    i.e. transposed vs torch's (out, in))."""
    B, d_in = x.shape
    d_in_pad = prepped["w1"].shape[0]
    d_out_pad = prepped["w4"].shape[1]

    batch_tile = _choose_batch_tile(B)
    b_pad = _round_up(max(B, 1), batch_tile)

    # Single fused pad+cast op for the activations (only per-call prep left).
    xp = jnp.pad(x.astype(jnp.bfloat16),
                 ((0, b_pad - B), (0, d_in_pad - d_in)))

    grid = (b_pad // batch_tile,)

    def x_map(i):
        return (i, 0)

    def rep_map(i):            # constant block index -> weights stay resident
        return (0, 0)

    w1, w2, w3, w4 = prepped["w1"], prepped["w2"], prepped["w3"], prepped["w4"]
    b1, b2, b3, b4 = prepped["b1"], prepped["b2"], prepped["b3"], prepped["b4"]

    flops = 2 * b_pad * (d_in_pad * HIDDEN + 2 * HIDDEN * HIDDEN
                         + HIDDEN * d_out_pad)
    bytes_accessed = (xp.size * 2
                      + (w1.size + w2.size + w3.size + w4.size) * 2
                      + (b1.size + b2.size + b3.size + b4.size) * 4
                      + b_pad * d_out_pad * 4)

    out = pl.pallas_call(
        _mlp_kernel,
        out_shape=jax.ShapeDtypeStruct((b_pad, d_out_pad), jnp.float32),
        grid_spec=pltpu.PrefetchScalarGridSpec(
            num_scalar_prefetch=0,
            grid=grid,
            in_specs=[
                pl.BlockSpec((batch_tile, d_in_pad), x_map),   # x tile (bf16)
                pl.BlockSpec(w1.shape, rep_map),               # W1 (bf16, padded K)
                pl.BlockSpec(b1.shape, rep_map),               # b1 (f32)
                pl.BlockSpec(w2.shape, rep_map),               # W2
                pl.BlockSpec(b2.shape, rep_map),               # b2
                pl.BlockSpec(w3.shape, rep_map),               # W3
                pl.BlockSpec(b3.shape, rep_map),               # b3
                pl.BlockSpec(w4.shape, rep_map),               # W4 (padded cols)
                pl.BlockSpec(b4.shape, rep_map),               # b4 (padded)
            ],
            out_specs=pl.BlockSpec((batch_tile, d_out_pad), x_map),
        ),
        compiler_params=pltpu.CompilerParams(
            dimension_semantics=("parallel",)),
        cost_estimate=pl.CostEstimate(
            flops=int(flops), transcendentals=0,
            bytes_accessed=int(bytes_accessed)),
    )(xp, w1, b1, w2, b2, w3, b3, w4, b4)

    return out[:B, :d_out]


def init_params(key, input_size, output_size, hidden=HIDDEN):
    """Deterministic synthetic init (PyTorch-like uniform ranges), f32 master copy."""
    dims = [(input_size, hidden), (hidden, hidden), (hidden, hidden),
            (hidden, output_size)]
    params = {}
    for idx, (fan_in, fan_out) in enumerate(dims, start=1):
        key, kw, kb = jax.random.split(key, 3)
        bound = 1.0 / (fan_in ** 0.5)
        params[f"w{idx}"] = jax.random.uniform(
            kw, (fan_in, fan_out), jnp.float32, -bound, bound)
        params[f"b{idx}"] = jax.random.uniform(
            kb, (1, fan_out), jnp.float32, -bound, bound)
    return params


def reference_forward_f32(x, params):
    """Pure-f32 reference (exactly the PyTorch module's math)."""
    h = jnp.maximum(x @ params["w1"] + params["b1"], 0.0)
    h = jnp.maximum(h @ params["w2"] + params["b2"], 0.0)
    h = jnp.maximum(h @ params["w3"] + params["b3"], 0.0)
    return h @ params["w4"] + params["b4"]


def reference_forward_bf16(x, params):
    """Reference with the kernel's numerics: bf16 dot operands, f32 accumulate."""
    bf, f32 = jnp.bfloat16, jnp.float32
    h = jnp.dot(x.astype(bf), params["w1"].astype(bf), preferred_element_type=f32)
    h = jnp.maximum(h + params["b1"], 0.0)
    h = jnp.dot(h.astype(bf), params["w2"].astype(bf), preferred_element_type=f32)
    h = jnp.maximum(h + params["b2"], 0.0)
    h = jnp.dot(h.astype(bf), params["w3"].astype(bf), preferred_element_type=f32)
    h = jnp.maximum(h + params["b3"], 0.0)
    return (jnp.dot(h.astype(bf), params["w4"].astype(bf),
                    preferred_element_type=f32) + params["b4"])


if __name__ == "__main__":
    key = jax.random.PRNGKey(0)
    input_size, output_size = 32, 16

    kx, kp, kx2 = jax.random.split(key, 3)
    params = init_params(kp, input_size, output_size)
    prepped, d_out = prepare_params(params)   # one-time layout prep

    # Small batch: B=300 -> single 304-row grid step (no tile waste).
    batch = 300
    x = jax.random.normal(kx, (batch, input_size), jnp.float32)
    out = jax.block_until_ready(lfh_model_forward(x, prepped, d_out=d_out))

    ref_bf16 = reference_forward_bf16(x, params)   # same numerics as the kernel
    ref_f32 = reference_forward_f32(x, params)     # PyTorch-equivalent f32 math

    assert out.shape == (batch, output_size)
    assert jnp.allclose(out, ref_bf16, atol=1e-2, rtol=1e-2), \
        "mismatch vs bf16-emulated reference (small batch)"
    assert jnp.allclose(out, ref_f32, atol=1e-1, rtol=1e-1), \
        "mismatch vs f32 reference (small batch)"

    # Larger batch: B=700 -> 512-row tiles, 2 grid steps (exercises the
    # multi-step / megacore-parallel path and pad-to-tile slicing).
    batch2 = 700
    x2 = jax.random.normal(kx2, (batch2, input_size), jnp.float32)
    out2 = jax.block_until_ready(lfh_model_forward(x2, prepped, d_out=d_out))

    ref2_bf16 = reference_forward_bf16(x2, params)
    ref2_f32 = reference_forward_f32(x2, params)

    assert out2.shape == (batch2, output_size)
    assert jnp.allclose(out2, ref2_bf16, atol=1e-2, rtol=1e-2), \
        "mismatch vs bf16-emulated reference (large batch)"
    assert jnp.allclose(out2, ref2_f32, atol=1e-1, rtol=1e-1), \
        "mismatch vs f32 reference (large batch)"

    print("KERNEL_OK")
</pallas_src>

<mosaic_0001>
module attributes {stable_mosaic.version = 11 : i64} {
  func.func @_mlp_kernel(%arg0: i32, %arg1: memref<304x128xbf16, #tpu.memory_space<vmem>>, %arg2: memref<128x256xbf16, #tpu.memory_space<vmem>>, %arg3: memref<1x256xf32, #tpu.memory_space<vmem>>, %arg4: memref<256x256xbf16, #tpu.memory_space<vmem>>, %arg5: memref<1x256xf32, #tpu.memory_space<vmem>>, %arg6: memref<256x256xbf16, #tpu.memory_space<vmem>>, %arg7: memref<1x256xf32, #tpu.memory_space<vmem>>, %arg8: memref<256x128xbf16, #tpu.memory_space<vmem>>, %arg9: memref<1x128xf32, #tpu.memory_space<vmem>>, %arg10: memref<304x128xf32, #tpu.memory_space<vmem>>) attributes {dimension_semantics = [#tpu.dimension_semantics<parallel>], iteration_bounds = array<i64: 1>, scalar_prefetch = 0 : i64, scratch_operands = 0 : i64, tpu.core_type = #tpu.core_type<tc>, window_params = [{transform_indices = @transform_0, window_bounds = array<i64: 304, 128>}, {pipeline_mode = #tpu.pipeline_mode<synchronous>, transform_indices = @transform_1, window_bounds = array<i64: 128, 256>}, {pipeline_mode = #tpu.pipeline_mode<synchronous>, transform_indices = @transform_2, window_bounds = array<i64: 1, 256>}, {pipeline_mode = #tpu.pipeline_mode<synchronous>, transform_indices = @transform_3, window_bounds = array<i64: 256, 256>}, {pipeline_mode = #tpu.pipeline_mode<synchronous>, transform_indices = @transform_4, window_bounds = array<i64: 1, 256>}, {pipeline_mode = #tpu.pipeline_mode<synchronous>, transform_indices = @transform_5, window_bounds = array<i64: 256, 256>}, {pipeline_mode = #tpu.pipeline_mode<synchronous>, transform_indices = @transform_6, window_bounds = array<i64: 1, 256>}, {pipeline_mode = #tpu.pipeline_mode<synchronous>, transform_indices = @transform_7, window_bounds = array<i64: 256, 128>}, {pipeline_mode = #tpu.pipeline_mode<synchronous>, transform_indices = @transform_8, window_bounds = array<i64: 1, 128>}, {transform_indices = @transform_9, window_bounds = array<i64: 304, 128>}]} {
    %c0 = arith.constant 0 : index
    %c0_0 = arith.constant 0 : index
    %0 = vector.load %arg1[%c0, %c0_0] : memref<304x128xbf16, #tpu.memory_space<vmem>>, vector<304x128xbf16>
    %c0_1 = arith.constant 0 : index
    %c0_2 = arith.constant 0 : index
    %1 = vector.load %arg2[%c0_1, %c0_2] : memref<128x256xbf16, #tpu.memory_space<vmem>>, vector<128x256xbf16>
    %cst = arith.constant dense<0.000000e+00> : vector<304x256xf32>
    %2 = tpu.matmul %0, %1, %cst {dimension_numbers = #tpu.dot_dimension_numbers<[1], [0], [0], [1], [0, 0, 1, 1], [], []>} : vector<304x128xbf16>, vector<128x256xbf16>, vector<304x256xf32> -> vector<304x256xf32>
    %c0_3 = arith.constant 0 : index
    %c0_4 = arith.constant 0 : index
    %3 = vector.load %arg3[%c0_3, %c0_4] : memref<1x256xf32, #tpu.memory_space<vmem>>, vector<1x256xf32>
    %4 = vector.broadcast %3 : vector<1x256xf32> to vector<304x256xf32>
    %5 = arith.addf %2, %4 : vector<304x256xf32>
    %cst_5 = arith.constant 0.000000e+00 : f32
    %6 = vector.broadcast %cst_5 : f32 to vector<304x256xf32>
    %7 = arith.maximumf %5, %6 : vector<304x256xf32>
    %8 = arith.truncf %7 : vector<304x256xf32> to vector<304x256xbf16>
    %c0_6 = arith.constant 0 : index
    %c0_7 = arith.constant 0 : index
    %9 = vector.load %arg4[%c0_6, %c0_7] : memref<256x256xbf16, #tpu.memory_space<vmem>>, vector<256x256xbf16>
    %cst_8 = arith.constant dense<0.000000e+00> : vector<304x256xf32>
    %10 = tpu.matmul %8, %9, %cst_8 {dimension_numbers = #tpu.dot_dimension_numbers<[1], [0], [0], [1], [0, 0, 1, 1], [], []>} : vector<304x256xbf16>, vector<256x256xbf16>, vector<304x256xf32> -> vector<304x256xf32>
    %c0_9 = arith.constant 0 : index
    %c0_10 = arith.constant 0 : index
    %11 = vector.load %arg5[%c0_9, %c0_10] : memref<1x256xf32, #tpu.memory_space<vmem>>, vector<1x256xf32>
    %12 = vector.broadcast %11 : vector<1x256xf32> to vector<304x256xf32>
    %13 = arith.addf %10, %12 : vector<304x256xf32>
    %cst_11 = arith.constant 0.000000e+00 : f32
    %14 = vector.broadcast %cst_11 : f32 to vector<304x256xf32>
    %15 = arith.maximumf %13, %14 : vector<304x256xf32>
    %16 = arith.truncf %15 : vector<304x256xf32> to vector<304x256xbf16>
    %c0_12 = arith.constant 0 : index
    %c0_13 = arith.constant 0 : index
    %17 = vector.load %arg6[%c0_12, %c0_13] : memref<256x256xbf16, #tpu.memory_space<vmem>>, vector<256x256xbf16>
    %cst_14 = arith.constant dense<0.000000e+00> : vector<304x256xf32>
    %18 = tpu.matmul %16, %17, %cst_14 {dimension_numbers = #tpu.dot_dimension_numbers<[1], [0], [0], [1], [0, 0, 1, 1], [], []>} : vector<304x256xbf16>, vector<256x256xbf16>, vector<304x256xf32> -> vector<304x256xf32>
    %c0_15 = arith.constant 0 : index
    %c0_16 = arith.constant 0 : index
    %19 = vector.load %arg7[%c0_15, %c0_16] : memref<1x256xf32, #tpu.memory_space<vmem>>, vector<1x256xf32>
    %20 = vector.broadcast %19 : vector<1x256xf32> to vector<304x256xf32>
    %21 = arith.addf %18, %20 : vector<304x256xf32>
    %cst_17 = arith.constant 0.000000e+00 : f32
    %22 = vector.broadcast %cst_17 : f32 to vector<304x256xf32>
    %23 = arith.maximumf %21, %22 : vector<304x256xf32>
    %24 = arith.truncf %23 : vector<304x256xf32> to vector<304x256xbf16>
    %c0_18 = arith.constant 0 : index
    %c0_19 = arith.constant 0 : index
    %25 = vector.load %arg8[%c0_18, %c0_19] : memref<256x128xbf16, #tpu.memory_space<vmem>>, vector<256x128xbf16>
    %cst_20 = arith.constant dense<0.000000e+00> : vector<304x128xf32>
    %26 = tpu.matmul %24, %25, %cst_20 {dimension_numbers = #tpu.dot_dimension_numbers<[1], [0], [0], [1], [0, 0, 1, 1], [], []>} : vector<304x256xbf16>, vector<256x128xbf16>, vector<304x128xf32> -> vector<304x128xf32>
    %c0_21 = arith.constant 0 : index
    %c0_22 = arith.constant 0 : index
    %27 = vector.load %arg9[%c0_21, %c0_22] : memref<1x128xf32, #tpu.memory_space<vmem>>, vector<1x128xf32>
    %28 = vector.broadcast %27 : vector<1x128xf32> to vector<304x128xf32>
    %29 = arith.addf %26, %28 : vector<304x128xf32>
    %c0_23 = arith.constant 0 : index
    %c0_24 = arith.constant 0 : index
    %30 = vector.load %arg10[%c0_23, %c0_24] : memref<304x128xf32, #tpu.memory_space<vmem>>, vector<304x128xf32>
    tpu.vector_store %arg10[%c0_23, %c0_24], %29 {strides = array<i32>} : memref<304x128xf32, #tpu.memory_space<vmem>>, vector<304x128xf32>,
    return
  }
  func.func @transform_0(%arg0: i32) -> (i32, i32) {
    %c0_i32 = arith.constant 0 : i32
    %c0_i32_0 = arith.constant 0 : i32
    return %arg0, %c0_i32 : i32, i32
  }
  func.func @transform_1(%arg0: i32) -> (i32, i32) {
    %c0_i32 = arith.constant 0 : i32
    %c0_i32_0 = arith.constant 0 : i32
    %c0_i32_1 = arith.constant 0 : i32
    return %c0_i32, %c0_i32_0 : i32, i32
  }
  func.func @transform_2(%arg0: i32) -> (i32, i32) {
    %c0_i32 = arith.constant 0 : i32
    %c0_i32_0 = arith.constant 0 : i32
    %c0_i32_1 = arith.constant 0 : i32
    return %c0_i32, %c0_i32_0 : i32, i32
  }
  func.func @transform_3(%arg0: i32) -> (i32, i32) {
    %c0_i32 = arith.constant 0 : i32
    %c0_i32_0 = arith.constant 0 : i32
    %c0_i32_1 = arith.constant 0 : i32
    return %c0_i32, %c0_i32_0 : i32, i32
  }
  func.func @transform_4(%arg0: i32) -> (i32, i32) {
    %c0_i32 = arith.constant 0 : i32
    %c0_i32_0 = arith.constant 0 : i32
    %c0_i32_1 = arith.constant 0 : i32
    return %c0_i32, %c0_i32_0 : i32, i32
  }
  func.func @transform_5(%arg0: i32) -> (i32, i32) {
    %c0_i32 = arith.constant 0 : i32
    %c0_i32_0 = arith.constant 0 : i32
    %c0_i32_1 = arith.constant 0 : i32
    return %c0_i32, %c0_i32_0 : i32, i32
  }
  func.func @transform_6(%arg0: i32) -> (i32, i32) {
    %c0_i32 = arith.constant 0 : i32
    %c0_i32_0 = arith.constant 0 : i32
    %c0_i32_1 = arith.constant 0 : i32
    return %c0_i32, %c0_i32_0 : i32, i32
  }
  func.func @transform_7(%arg0: i32) -> (i32, i32) {
    %c0_i32 = arith.constant 0 : i32
    %c0_i32_0 = arith.constant 0 : i32
    %c0_i32_1 = arith.constant 0 : i32
    return %c0_i32, %c0_i32_0 : i32, i32
  }
  func.func @transform_8(%arg0: i32) -> (i32, i32) {
    %c0_i32 = arith.constant 0 : i32
    %c0_i32_0 = arith.constant 0 : i32
    %c0_i32_1 = arith.constant 0 : i32
    return %c0_i32, %c0_i32_0 : i32, i32
  }
  func.func @transform_9(%arg0: i32) -> (i32, i32) {
    %c0_i32 = arith.constant 0 : i32
    %c0_i32_0 = arith.constant 0 : i32
    return %arg0, %c0_i32 : i32, i32
  }
}

</mosaic_0001>

<bundles_post_ra>
// kernel: lfh_model_forward.1
= control target key start
LH: loop header
LB: loop body
LE: loop exit
PB: predicated region body
PF: predicated region fallthrough
CT: control target
= control target key end

     0   :  { %14 = vsyncpa [#allocation3], 0  ;;  %s2418_s30 = smov [#allocation2]   ;;  %s3255_s0 = inlined_call_operand.vmem [shape: bf16[304,128], index: 0, kind: input, shape index: {}]   ;;  %s3256_s1 = inlined_call_operand.vmem [shape: bf16[128,256], index: 1, kind: input, shape index: {}]   ;;  %s3257_s2 = inlined_call_operand.vmem [shape: f32[1,256], index: 2, kind: input, shape index: {}]   ;;  %s3258_s3 = inlined_call_operand.vmem [shape: bf16[256,256], index: 3, kind: input, shape index: {}]   ;;  %s3259_s4 = inlined_call_operand.vmem [shape: f32[1,256], index: 4, kind: input, shape index: {}]   ;;  %s3260_s5 = inlined_call_operand.vmem [shape: bf16[256,256], index: 5, kind: input, shape index: {}]   ;;  %s3261_s6 = inlined_call_operand.vmem [shape: f32[1,256], index: 6, kind: input, shape index: {}]   ;;  %s3262_s7 = inlined_call_operand.hbm [shape: bf16[256,128], index: 7, kind: input, shape index: {}]   ;;  %s3263_s8 = inlined_call_operand.vmem [shape: f32[1,128], index: 8, kind: input, shape index: {}]   ;;  %s3264_s9 = inlined_call_operand.vmem [shape: f32[304,128], index: 9, kind: output, shape index: {}]  }
   0x1   :  { %s34_s10 = sshll.u32 %s2418_s30, 4  ;;  %s35_s10 = int_to_ptr.vmem [resolvable:$true] %s34_s10 }
   0x2   :  { %s2404_s11 = scalar_lea.vmem %s35_s10, 2048  ;;  %p2409_p1 = scmp.lt.s32.totalorder %s35_s10, %s35_s10 }
   0x3   :  { %p2405_p0 = scmp.ne.s32.totalorder %s35_s10, %s2404_s11  ;;  %p2410_p2 = scmp.lt.s32.totalorder %s2404_s11, %s2404_s11 }
   0x5   :  { %p2411_p3 = por %p2410_p2, %p2409_p1 }
   0x7   :  { %p2412_p4 = pnand %p2411_p3, %p2405_p0 }
   0x9   :  { %2415 = shalt.err (!%p2412_p4)
}
   0xa   :  { %s2419_s12 = smov 64   ;;  %s2420_s13 = smov 4  }
   0xb   :  { %40 = dma.hbm_to_vmem [thread:$0]  %s3262_s7, 2048, %s35_s10, [#allocation3], %s2419_s12, %s2419_s12, %s2420_s13  }
   0xc   :  { %2416 = dma.done.wait [#allocation3], 2048  }
   0xd   :  { %2417 = vsyncadd [#allocation3], 4294965248  ;;  %v2421_v0 = vmov 0   ;;  %v2241_v1 = vld [vmem:[%s3256_s1 + $0x74] ss:$8 sps:$4 sm:$0xff]   ;;  %v2265_v17 = vld [vmem:[%s3255_s0] sm:$0xff]  }
   0xe   :  { %339 = vmatprep.mubr.bf16.mxu0 %v2421_v0  ;;  %v2243_v2 = vld [vmem:[%s3256_s1 + $0x70] ss:$8 sps:$4 sm:$0xff]   ;;  %307 = vmatprep.subr.bf16.mxu0 %v2241_v1  ;;  %v2244_v3 = vld [vmem:[%s3256_s1 + $0x64] ss:$8 sps:$4 sm:$0xff]   ;;  %v2246_v4 = vld [vmem:[%s3256_s1 + $0x60] ss:$8 sps:$4 sm:$0xff]  }
   0xf   :  { %308 = vmatpush1.bf16.msra.mxu0 %v2243_v2  ;;  %v2247_v5 = vld [vmem:[%s3256_s1 + $0x54] ss:$8 sps:$4 sm:$0xff]   ;;  %v2249_v6 = vld [vmem:[%s3256_s1 + $0x50] ss:$8 sps:$4 sm:$0xff]   ;;  %v2250_v7 = vld [vmem:[%s3256_s1 + $0x44] ss:$8 sps:$4 sm:$0xff]  }
  0x10   :  { %309 = vmatprep.subr.bf16.mxu0 %v2244_v3  ;;  %v2252_v8 = vld [vmem:[%s3256_s1 + $0x40] ss:$8 sps:$4 sm:$0xff]   ;;  %v2253_v9 = vld [vmem:[%s3256_s1 + $0x34] ss:$8 sps:$4 sm:$0xff]   ;;  %v2255_v10 = vld [vmem:[%s3256_s1 + $0x30] ss:$8 sps:$4 sm:$0xff]  }
  0x11   :  { %v2256_v11 = vld [vmem:[%s3256_s1 + $0x24] ss:$8 sps:$4 sm:$0xff]   ;;  %v2258_v12 = vld [vmem:[%s3256_s1 + $0x20] ss:$8 sps:$4 sm:$0xff]   ;;  %v2259_v13 = vld [vmem:[%s3256_s1 + $0x14] ss:$8 sps:$4 sm:$0xff]  }
  0x12   :  { %v2261_v14 = vld [vmem:[%s3256_s1 + $0x10] ss:$8 sps:$4 sm:$0xff]   ;;  %v2262_v15 = vld [vmem:[%s3256_s1 + $0x4] ss:$8 sps:$4 sm:$0xff]   ;;  %v2264_v16 = vld [vmem:[%s3256_s1] ss:$8 sps:$4 sm:$0xff]  }
  0x13   :  { %310 = vmatpush1.bf16.msra.mxu0 %v2246_v4  ;;  %v2266_v18 = vld [vmem:[%s3255_s0 + $0x8] sm:$0xff]   ;;  %v2283_v19 = vld [vmem:[%s3258_s3 + $0x74] ss:$8 sps:$4 sm:$0xff]   ;;  %v2285_v20 = vld [vmem:[%s3258_s3 + $0x70] ss:$8 sps:$4 sm:$0xff]  }
  0x14   :  { %311 = vmatprep.subr.bf16.mxu0 %v2247_v5  ;;  %v2267_v21 = vld [vmem:[%s3255_s0 + $0x10] sm:$0xff]   ;;  %848 = vmatprep.subr.bf16.mxu1 %v2283_v19  ;;  %v2287_v22 = vld [vmem:[%s3258_s3 + $0x64] ss:$8 sps:$4 sm:$0xff]   ;;  %v2289_v23 = vld [vmem:[%s3258_s3 + $0x60] ss:$8 sps:$4 sm:$0xff]  }
  0x15   :  { %849 = vmatpush1.bf16.msra.mxu1 %v2285_v20  ;;  %v2290_v24 = vld [vmem:[%s3258_s3 + $0x54] ss:$8 sps:$4 sm:$0xff]   ;;  %v2292_v25 = vld [vmem:[%s3258_s3 + $0x50] ss:$8 sps:$4 sm:$0xff]   ;;  %v2293_v27 = vld [vmem:[%s3258_s3 + $0x44] ss:$8 sps:$4 sm:$0xff]  }
  0x16   :  { %850 = vmatprep.subr.bf16.mxu1 %v2287_v22  ;;  %v2268_v26 = vld [vmem:[%s3255_s0 + $0x18] sm:$0xff]   ;;  %v2295_v28 = vld [vmem:[%s3258_s3 + $0x40] ss:$8 sps:$4 sm:$0xff]   ;;  %v2299_v32 = vld [vmem:[%s3258_s3 + $0x24] ss:$8 sps:$4 sm:$0xff]  }
  0x17   :  { %312 = vmatpush1.bf16.msra.mxu0 %v2249_v6  ;;  %v2296_v29 = vld [vmem:[%s3258_s3 + $0x34] ss:$8 sps:$4 sm:$0xff]   ;;  %v2298_v30 = vld [vmem:[%s3258_s3 + $0x30] ss:$8 sps:$4 sm:$0xff]   ;;  %v2269_v31 = vld [vmem:[%s3255_s0 + $0x20] sm:$0xff]  }
  0x18   :  { %313 = vmatprep.subr.bf16.mxu0 %v2250_v7  ;;  %v2301_v33 = vld [vmem:[%s3258_s3 + $0x20] ss:$8 sps:$4 sm:$0xff]   ;;  %v2302_v34 = vld [vmem:[%s3258_s3 + $0x14] ss:$8 sps:$4 sm:$0xff]   ;;  %v2304_v35 = vld [vmem:[%s3258_s3 + $0x10] ss:$8 sps:$4 sm:$0xff]  }
  0x19   :  { %851 = vmatpush1.bf16.msra.mxu1 %v2289_v23  ;;  %v2270_v36 = vld [vmem:[%s3255_s0 + $0x28] sm:$0xff]   ;;  %v2308_v39 = vld [vmem:[%s3258_s3 + $0xf4] ss:$8 sps:$4 sm:$0xff]   ;;  %v2310_v40 = vld [vmem:[%s3258_s3 + $0xf0] ss:$8 sps:$4 sm:$0xff]  }
  0x1a   :  { %852 = vmatprep.subr.bf16.mxu1 %v2290_v24  ;;  %v2305_v37 = vld [vmem:[%s3258_s3 + $0x4] ss:$8 sps:$4 sm:$0xff]   ;;  %v2307_v38 = vld [vmem:[%s3258_s3] ss:$8 sps:$4 sm:$0xff]   ;;  %v2271_v41 = vld [vmem:[%s3255_s0 + $0x30] sm:$0xff]  }
  0x1b   :  { %314 = vmatpush1.bf16.msra.mxu0 %v2252_v8  ;;  %v2311_v42 = vld [vmem:[%s3258_s3 + $0xe4] ss:$8 sps:$4 sm:$0xff]   ;;  %v2313_v43 = vld [vmem:[%s3258_s3 + $0xe0] ss:$8 sps:$4 sm:$0xff]   ;;  %v2314_v44 = vld [vmem:[%s3258_s3 + $0xd4] ss:$8 sps:$4 sm:$0xff]  }
  0x1c   :  { %315 = vmatprep.subr.bf16.mxu0 %v2253_v9  ;;  %v2316_v45 = vld [vmem:[%s3258_s3 + $0xd0] ss:$8 sps:$4 sm:$0xff]   ;;  %v2317_v47 = vld [vmem:[%s3258_s3 + $0xc4] ss:$8 sps:$4 sm:$0xff]   ;;  %v2319_v48 = vld [vmem:[%s3258_s3 + $0xc0] ss:$8 sps:$4 sm:$0xff]  }
  0x1d   :  { %853 = vmatpush1.bf16.msra.mxu1 %v2292_v25  ;;  %v2272_v46 = vld [vmem:[%s3255_s0 + $0x38] sm:$0xff]   ;;  %v2273_v51 = vld [vmem:[%s3255_s0 + $0x40] sm:$0xff]   ;;  %v2274_v54 = vld [vmem:[%s3255_s0 + $0x48] sm:$0xff]  }
  0x1e   :  { %854 = vmatprep.subr.bf16.mxu1 %v2293_v27  ;;  %v2320_v49 = vld [vmem:[%s3258_s3 + $0xb4] ss:$8 sps:$4 sm:$0xff]   ;;  %v2322_v50 = vld [vmem:[%s3258_s3 + $0xb0] ss:$8 sps:$4 sm:$0xff]   ;;  %v2323_v52 = vld [vmem:[%s3258_s3 + $0xa4] ss:$8 sps:$4 sm:$0xff]  }
  0x1f   :  { %316 = vmatpush1.bf16.msra.mxu0 %v2255_v10  ;;  %v2325_v53 = vld [vmem:[%s3258_s3 + $0xa0] ss:$8 sps:$4 sm:$0xff]   ;;  %v2326_v55 = vld [vmem:[%s3258_s3 + $0x94] ss:$8 sps:$4 sm:$0xff]   ;;  %v2328_v56 = vld [vmem:[%s3258_s3 + $0x90] ss:$8 sps:$4 sm:$0xff]  }
  0x20   :  { %317 = vmatprep.subr.bf16.mxu0 %v2256_v11  ;;  %v2329_v57 = vld [vmem:[%s3258_s3 + $0x84] ss:$8 sps:$4 sm:$0xff]   ;;  %v2331_v58 = vld [vmem:[%s3258_s3 + $0x80] ss:$8 sps:$4 sm:$0xff]   ;;  %v2275_v59 = vld [vmem:[%s3255_s0 + $0x50] sm:$0xff]  }
  0x21   :  { %855 = vmatpush1.bf16.msra.mxu1 %v2295_v28  ;;  %v2276_v60 = vld [vmem:[%s3255_s0 + $0x58] sm:$0xff]   ;;  %v2277_v61 = vld [vmem:[%s3255_s0 + $0x60] sm:$0xff]   ;;  %v2278_v62 = vld [vmem:[%s3255_s0 + $0x68] sm:$0xff]  }
  0x22   :  { %856 = vmatprep.subr.bf16.mxu1 %v2296_v29  ;;  %v2279_v63 = vld [vmem:[%s3255_s0 + $0x70] sm:$0xff]   ;;  %v2280_v1 = vld [vmem:[%s3255_s0 + $0x78] sm:$0xff]   ;;  %v2281_v2 = vld [vmem:[%s3255_s0 + $0x80] sm:$0xff]  }
  0x23   :  { %318 = vmatpush1.bf16.msra.mxu0 %v2258_v12  ;;  %v2282_v3 = vld [vmem:[%s3255_s0 + $0x88] sm:$0xff]   ;;  %v2332_v4 = vld [vmem:[%s3260_s5 + $0x70] ss:$8 sps:$4 sm:$0xff]   ;;  %v2334_v5 = vld [vmem:[%s3260_s5 + $0x74] ss:$8 sps:$4 sm:$0xff]  }
  0x24   :  { %319 = vmatprep.subr.bf16.mxu0 %v2259_v13  ;;  %v2286_v6 = vld [vmem:[%s3255_s0 + $0x90] sm:$0xff]   ;;  %v2335_v7 = vld [vmem:[%s3260_s5 + $0x60] ss:$8 sps:$4 sm:$0xff]   ;;  %v2337_v8 = vld [vmem:[%s3260_s5 + $0x64] ss:$8 sps:$4 sm:$0xff]  }
  0x25   :  { %857 = vmatpush1.bf16.msra.mxu1 %v2298_v30  ;;  %v2338_v9 = vld [vmem:[%s3260_s5 + $0x50] ss:$8 sps:$4 sm:$0xff]   ;;  %v2340_v10 = vld [vmem:[%s3260_s5 + $0x54] ss:$8 sps:$4 sm:$0xff]   ;;  %v2341_v11 = vld [vmem:[%s3260_s5 + $0x40] ss:$8 sps:$4 sm:$0xff]  }
  0x26   :  { %858 = vmatprep.subr.bf16.mxu1 %v2299_v32  ;;  %v2343_v12 = vld [vmem:[%s3260_s5 + $0x44] ss:$8 sps:$4 sm:$0xff]   ;;  %v2344_v13 = vld [vmem:[%s3260_s5 + $0x30] ss:$8 sps:$4 sm:$0xff]   ;;  %v2352_v25 = vld [vmem:[%s3260_s5 + $0x14] ss:$8 sps:$4 sm:$0xff]  }
  0x27   :  { %320 = vmatpush1.bf16.msra.mxu0 %v2261_v14  ;;  %v2346_v14 = vld [vmem:[%s3260_s5 + $0x34] ss:$8 sps:$4 sm:$0xff]   ;;  %v2350_v24 = vld [vmem:[%s3260_s5 + $0x10] ss:$8 sps:$4 sm:$0xff]  }
  0x28   :  { %321 = vmatprep.subr.bf16.mxu0 %v2262_v15  ;;  %v2347_v15 = vld [vmem:[%s3260_s5 + $0x20] ss:$8 sps:$4 sm:$0xff]  }
  0x29   :  { %859 = vmatpush1.bf16.msra.mxu1 %v2301_v33 }
  0x2a   :  { %860 = vmatprep.subr.bf16.mxu1 %v2302_v34 }
  0x2b   :  { %322 = vmatpush1.bf16.msra.mxu0 %v2264_v16  ;;  %v2349_v16 = vld [vmem:[%s3260_s5 + $0x24] ss:$8 sps:$4 sm:$0xff]  }
  0x2c   :  { %1389 = vmatprep.subr.bf16.mxu0 %v2334_v5 }
  0x2d   :  { %861 = vmatpush1.bf16.msra.mxu1 %v2304_v35 }
  0x2e   :  { %340 = vmatmul.mubr.bf16.vlgmr.msra.gmra.mxu0 %v2265_v17  ;;  %862 = vmatprep.subr.bf16.mxu1 %v2305_v37  ;;  %v103_v17 = vlaneseq }
  0x2f   :  { %349 = vmatprep.mubr.bf16.mxu0 %v2421_v0  ;;  %1390 = vmatpush1.bf16.msra.mxu0 %v2332_v4 }
  0x30   :  { %1391 = vmatprep.subr.bf16.mxu0 %v2337_v8 }
  0x31   :  { %863 = vmatpush1.bf16.msra.mxu1 %v2307_v38 }
  0x32   :  { %864 = vmatprep.subr.bf16.mxu1 %v2308_v39 }
  0x33   :  { %1392 = vmatpush1.bf16.msra.mxu0 %v2335_v7 }
  0x34   :  { %1393 = vmatprep.subr.bf16.mxu0 %v2340_v10  ;;  %v2359_v10 = vld [vmem:[%s3260_s5 + $0xe0] ss:$8 sps:$4 sm:$0xff]  }
  0x35   :  { %865 = vmatpush2.bf16.msra.mxu1 %v2310_v40 }
  0x36   :  { %350 = vmatmul.mubr.bf16.gmra.mxu0 %v2266_v18  ;;  %866 = vmatprep.subr.bf16.mxu1 %v2311_v42  ;;  %v104_v18 = vshrl.u32 %v103_v17, 7  ;;  %v2355_v42 = vld [vmem:[%s3260_s5 + $0x4] ss:$8 sps:$4 sm:$0xff]  }
  0x37   :  { %359 = vmatprep.mubr.bf16.mxu0 %v2421_v0  ;;  %1394 = vmatpush1.bf16.msra.mxu0 %v2338_v9 }
  0x38   :  { %1395 = vmatprep.subr.bf16.mxu0 %v2343_v12  ;;  %v2732_v19 = vsub.s32 1, %v104_v18  ;;  %v2734_v20 = vsub.s32 0, %v104_v18  ;;  %v2362_v18 = vld [vmem:[%s3260_s5 + $0xd0] ss:$8 sps:$4 sm:$0xff]  }
  0x39   :  { %867 = vmatpush2.bf16.msra.mxu1 %v2313_v43 }
  0x3a   :  { %868 = vmatprep.subr.bf16.mxu1 %v2314_v44 }
  0x3b   :  { %1396 = vmatpush1.bf16.msra.mxu0 %v2341_v11  ;;  %v2361_v11 = vld [vmem:[%s3260_s5 + $0xe4] ss:$8 sps:$4 sm:$0xff]  }
  0x3c   :  { %1397 = vmatprep.subr.bf16.mxu0 %v2346_v14 }
  0x3d   :  { %869 = vmatpush2.bf16.msra.mxu1 %v2316_v45 }
  0x3e   :  { %360 = vmatmul.mubr.bf16.gmra.mxu0 %v2267_v21  ;;  %870 = vmatprep.subr.bf16.mxu1 %v2317_v47  ;;  %v101_v21 = vld [vmem:[%s3257_s2] sm:$0x3] }
  0x3f   :  { %369 = vmatprep.mubr.bf16.mxu0 %v2421_v0  ;;  %1398 = vmatpush1.bf16.msra.mxu0 %v2344_v13  ;;  %v2740_v23 = vrot.slane %v101_v21, %v2732_v19 }
  0x40   :  { %1399 = vmatprep.subr.bf16.mxu0 %v2349_v16 }
  0x41   :  { %871 = vmatpush2.bf16.msra.mxu1 %v2319_v48 }
  0x42   :  { %872 = vmatprep.subr.bf16.mxu1 %v2320_v49 }
  0x43   :  { %1400 = vmatpush1.bf16.msra.mxu0 %v2347_v15 }
  0x44   :  { %1401 = vmatprep.subr.bf16.mxu0 %v2352_v25 }
  0x45   :  { %873 = vmatpush2.bf16.msra.mxu1 %v2322_v50 }
  0x46   :  { %370 = vmatmul.mubr.bf16.gmra.mxu0 %v2268_v26  ;;  %874 = vmatprep.subr.bf16.mxu1 %v2323_v52  ;;  %v2749_v26 = vrot.slane %v101_v21, %v2734_v20  ;;  %v2364_v21 = vld [vmem:[%s3260_s5 + $0xd4] ss:$8 sps:$4 sm:$0xff]  }
  0x47   :  { %379 = vmatprep.mubr.bf16.mxu0 %v2421_v0  ;;  %1402 = vmatpush1.bf16.msra.mxu0 %v2350_v24  ;;  %v2367_v24 = vld [vmem:[%s3260_s5 + $0xc4] ss:$8 sps:$4 sm:$0xff]  }
  0x48   :  { %1403 = vmatprep.subr.bf16.mxu0 %v2355_v42 }
  0x49   :  { %875 = vmatpush2.bf16.msra.mxu1 %v2325_v53 }
  0x4a   :  { %876 = vmatprep.subr.bf16.mxu1 %v2326_v55 }
  0x4d   :  { %877 = vmatpush2.bf16.msra.mxu1 %v2328_v56 }
  0x4e   :  { %380 = vmatmul.mubr.bf16.gmra.mxu0 %v2269_v31  ;;  %878 = vmatprep.subr.bf16.mxu1 %v2329_v57  ;;  %v2356_v57 = vld [vmem:[%s3260_s5 + $0xf0] ss:$8 sps:$4 sm:$0xff]  }
  0x4f   :  { %389 = vmatprep.mubr.bf16.mxu0 %v2421_v0 }
  0x51   :  { %879 = vmatpush2.bf16.msra.mxu1 %v2331_v58  ;;  %v2358_v58 = vld [vmem:[%s3260_s5 + $0xf4] ss:$8 sps:$4 sm:$0xff]  }
  0x52   :  { %2205 = vmatprep.subr.bf16.mxu1 %v2421_v0 }
  0x56   :  { %390 = vmatmul.mubr.bf16.gmra.mxu0 %v2270_v36 }
  0x57   :  { %399 = vmatprep.mubr.bf16.mxu0 %v2421_v0 }
  0x5e   :  { %400 = vmatmul.mubr.bf16.gmra.mxu0 %v2271_v41  ;;  %v2353_v41 = vld [vmem:[%s3260_s5] ss:$8 sps:$4 sm:$0xff]  }
  0x5f   :  { %409 = vmatprep.mubr.bf16.mxu0 %v2421_v0  ;;  %1404 = vmatpush1.bf16.msra.mxu0 %v2353_v41  ;;  %v2368_v41 = vld [vmem:[%s3260_s5 + $0xb0] ss:$8 sps:$4 sm:$0xff]  }
  0x60   :  { %1405 = vmatprep.subr.bf16.mxu0 %v2358_v58 }
  0x63   :  { %1406 = vmatpush2.bf16.msra.mxu0 %v2356_v57 }
  0x64   :  { %1407 = vmatprep.subr.bf16.mxu0 %v2361_v11 }
  0x66   :  { %410 = vmatmul.mubr.bf16.gmra.mxu0 %v2272_v46 }
  0x67   :  { %419 = vmatprep.mubr.bf16.mxu0 %v2421_v0  ;;  %1408 = vmatpush2.bf16.msra.mxu0 %v2359_v10 }
  0x68   :  { %1409 = vmatprep.subr.bf16.mxu0 %v2364_v21 }
  0x6b   :  { %1410 = vmatpush2.bf16.msra.mxu0 %v2362_v18 }
  0x6c   :  { %1411 = vmatprep.subr.bf16.mxu0 %v2367_v24 }
  0x6e   :  { %420 = vmatmul.mubr.bf16.gmra.mxu0 %v2273_v51 }
  0x6f   :  { %429 = vmatprep.mubr.bf16.mxu0 %v2421_v0 }
  0x76   :  { %430 = vmatmul.mubr.bf16.gmra.mxu0 %v2274_v54 }
  0x77   :  { %439 = vmatprep.mubr.bf16.mxu0 %v2421_v0 }
  0x7e   :  { %440 = vmatmul.mubr.bf16.gmra.mxu0 %v2275_v59 }
  0x7f   :  { %449 = vmatprep.mubr.bf16.mxu0 %v2421_v0 }
  0x86   :  { %450 = vmatmul.mubr.bf16.gmra.mxu0 %v2276_v60 }
  0x87   :  { %459 = vmatprep.mubr.bf16.mxu0 %v2421_v0 }
  0x8e   :  { %460 = vmatmul.mubr.bf16.gmra.mxu0 %v2277_v61 }
  0x8f   :  { %469 = vmatprep.mubr.bf16.mxu0 %v2421_v0 }
  0x96   :  { %470 = vmatmul.mubr.bf16.gmra.mxu0 %v2278_v62 }
  0x97   :  { %479 = vmatprep.mubr.bf16.mxu0 %v2421_v0 }
  0x9e   :  { %480 = vmatmul.mubr.bf16.gmra.mxu0 %v2279_v63 }
  0x9f   :  { %489 = vmatprep.mubr.bf16.mxu0 %v2421_v0 }
  0xa6   :  { %490 = vmatmul.mubr.bf16.gmra.mxu0 %v2280_v1 }
  0xa7   :  { %499 = vmatprep.mubr.bf16.mxu0 %v2421_v0 }
  0xae   :  { %500 = vmatmul.mubr.bf16.gmra.mxu0 %v2281_v2 }
  0xaf   :  { %509 = vmatprep.mubr.bf16.mxu0 %v2421_v0 }
  0xb6   :  { %510 = vmatmul.mubr.bf16.gmra.mxu0 %v2282_v3 }
  0xb7   :  { %519 = vmatprep.mubr.bf16.mxu0 %v2421_v0 }
  0xbe   :  { %520 = vmatmul.mubr.bf16.gmra.mxu0 %v2286_v6 }
  0xee   :  { %v341_v22 = vpop.f32.mrf.mxu0 }
  0xef   :  { %v342_v31 = vadd.f32 %v341_v22, %v2749_v26 }
  0xf0   :  { %v343_v27 = vpop.f32.mrf.mxu0 }
  0xf1   :  { %v344_v29 = vadd.f32 %v343_v27, %v2740_v23  ;;  %v530_v38 = vmax.f32 %v342_v31, 0.0 }
  0xf2   :  { %v345_v28 = vpop.f32.mrf.mxu0 }
  0xf3   :  { %v346_v30 = vadd.f32 %v345_v28, %v2749_v26  ;;  %v531_v36 = vmax.f32 %v344_v29, 0.0 }
  0xf4   :  { %v347_v32 = vpop.f32.mrf.mxu0 }
  0xf5   :  { %v348_v33 = vadd.f32 %v347_v32, %v2740_v23  ;;  %v532_v34 = vmax.f32 %v346_v30, 0.0  ;;  %v2365_v32 = vld [vmem:[%s3260_s5 + $0xc0] ss:$8 sps:$4 sm:$0xff]  }
  0xf6   :  { %v351_v35 = vpop.f32.mrf.mxu0  ;;  %1412 = vmatpush2.bf16.msra.mxu0 %v2365_v32 }
  0xf7   :  { %v533_v37 = vmax.f32 %v348_v33, 0.0  ;;  %v606_v43 = vpack.c.bf16 %v532_v34, %v530_v38  ;;  %v352_v47 = vadd.f32 %v351_v35, %v2749_v26  ;;  %v2370_v34 = vld [vmem:[%s3260_s5 + $0xb4] ss:$8 sps:$4 sm:$0xff]  }
  0xf8   :  { %v353_v39 = vpop.f32.mrf.mxu0  ;;  %1413 = vmatprep.subr.bf16.mxu0 %v2370_v34 }
  0xf9   :  { %v607_v40 = vpack.c.bf16 %v533_v37, %v531_v36  ;;  %v354_v45 = vadd.f32 %v353_v39, %v2740_v23  ;;  %v534_v54 = vmax.f32 %v352_v47, 0.0 }
  0xfa   :  { %v355_v44 = vpop.f32.mrf.mxu0  ;;  %1414 = vmatpush2.bf16.msra.mxu0 %v2368_v41 }
  0xfb   :  { %v356_v46 = vadd.f32 %v355_v44, %v2749_v26  ;;  %880 = vmatprep.mubr.bf16.mxu1 %v607_v40  ;;  %v535_v52 = vmax.f32 %v354_v45, 0.0 }
  0xfc   :  { %v357_v48 = vpop.f32.mrf.mxu0  ;;  %881 = vmatmul.mubr.bf16.vlgmr.msra.gmra.mxu1 %v606_v43  ;;  %v2373_v43 = vld [vmem:[%s3260_s5 + $0xa4] ss:$8 sps:$4 sm:$0xff]  }
  0xfd   :  { %v358_v49 = vadd.f32 %v357_v48, %v2740_v23  ;;  %v536_v50 = vmax.f32 %v356_v46, 0.0  ;;  %1415 = vmatprep.subr.bf16.mxu0 %v2373_v43 }
  0xfe   :  { %v361_v51 = vpop.f32.mrf.mxu0 }
  0xff   :  { %v537_v53 = vmax.f32 %v358_v49, 0.0  ;;  %v608_v59 = vpack.c.bf16 %v536_v50, %v534_v54  ;;  %v362_v63 = vadd.f32 %v361_v51, %v2749_v26  ;;  %v2371_v50 = vld [vmem:[%s3260_s5 + $0xa0] ss:$8 sps:$4 sm:$0xff]  }
 0x100   :  { %v363_v55 = vpop.f32.mrf.mxu0  ;;  %1416 = vmatpush2.bf16.msra.mxu0 %v2371_v50 }
 0x101   :  { %v609_v56 = vpack.c.bf16 %v537_v53, %v535_v52  ;;  %v364_v61 = vadd.f32 %v363_v55, %v2740_v23  ;;  %v538_v7 = vmax.f32 %v362_v63, 0.0  ;;  %v2376_v52 = vld [vmem:[%s3260_s5 + $0x94] ss:$8 sps:$4 sm:$0xff]  }
 0x102   :  { %v365_v60 = vpop.f32.mrf.mxu0  ;;  %1417 = vmatprep.subr.bf16.mxu0 %v2376_v52 }
 0x103   :  { %v366_v62 = vadd.f32 %v365_v60, %v2749_v26  ;;  %890 = vmatprep.mubr.bf16.mxu1 %v609_v56  ;;  %v539_v5 = vmax.f32 %v364_v61, 0.0 }
 0x104   :  { %v367_v1 = vpop.f32.mrf.mxu0  ;;  %891 = vmatmul.mubr.bf16.gmra.mxu1 %v608_v59  ;;  %v2374_v59 = vld [vmem:[%s3260_s5 + $0x90] ss:$8 sps:$4 sm:$0xff]  }
 0x105   :  { %v368_v2 = vadd.f32 %v367_v1, %v2740_v23  ;;  %v540_v3 = vmax.f32 %v366_v62, 0.0  ;;  %1418 = vmatpush2.bf16.msra.mxu0 %v2374_v59 }
 0x106   :  { %v371_v4 = vpop.f32.mrf.mxu0 }
 0x107   :  { %v541_v6 = vmax.f32 %v368_v2, 0.0  ;;  %v610_v12 = vpack.c.bf16 %v540_v3, %v538_v7  ;;  %v372_v16 = vadd.f32 %v371_v4, %v2749_v26 }
 0x108   :  { %v373_v8 = vpop.f32.mrf.mxu0 }
 0x109   :  { %v611_v9 = vpack.c.bf16 %v541_v6, %v539_v5  ;;  %v374_v14 = vadd.f32 %v373_v8, %v2740_v23  ;;  %v542_v30 = vmax.f32 %v372_v16, 0.0 }
 0x10a   :  { %v375_v13 = vpop.f32.mrf.mxu0 }
 0x10b   :  { %v376_v15 = vadd.f32 %v375_v13, %v2749_v26  ;;  %900 = vmatprep.mubr.bf16.mxu1 %v611_v9  ;;  %v543_v28 = vmax.f32 %v374_v14, 0.0 }
 0x10c   :  { %v377_v17 = vpop.f32.mrf.mxu0  ;;  %901 = vmatmul.mubr.bf16.gmra.mxu1 %v610_v12 }
 0x10d   :  { %v378_v22 = vadd.f32 %v377_v17, %v2740_v23  ;;  %v544_v25 = vmax.f32 %v376_v15, 0.0 }
 0x10e   :  { %v381_v27 = vpop.f32.mrf.mxu0 }
 0x10f   :  { %v545_v29 = vmax.f32 %v378_v22, 0.0  ;;  %v612_v35 = vpack.c.bf16 %v544_v25, %v542_v30  ;;  %v382_v39 = vadd.f32 %v381_v27, %v2749_v26 }
 0x110   :  { %v383_v31 = vpop.f32.mrf.mxu0 }
 0x111   :  { %v613_v33 = vpack.c.bf16 %v545_v29, %v543_v28  ;;  %v384_v37 = vadd.f32 %v383_v31, %v2740_v23  ;;  %v546_v48 = vmax.f32 %v382_v39, 0.0 }
 0x112   :  { %v385_v36 = vpop.f32.mrf.mxu0 }
 0x113   :  { %v386_v38 = vadd.f32 %v385_v36, %v2749_v26  ;;  %910 = vmatprep.mubr.bf16.mxu1 %v613_v33  ;;  %v547_v46 = vmax.f32 %v384_v37, 0.0 }
 0x114   :  { %v387_v40 = vpop.f32.mrf.mxu0  ;;  %911 = vmatmul.mubr.bf16.gmra.mxu1 %v612_v35 }
 0x115   :  { %v388_v42 = vadd.f32 %v387_v40, %v2740_v23  ;;  %v548_v44 = vmax.f32 %v386_v38, 0.0 }
 0x116   :  { %v391_v45 = vpop.f32.mrf.mxu0 }
 0x117   :  { %v549_v47 = vmax.f32 %v388_v42, 0.0  ;;  %v614_v53 = vpack.c.bf16 %v548_v44, %v546_v48  ;;  %v392_v57 = vadd.f32 %v391_v45, %v2749_v26 }
 0x118   :  { %v393_v49 = vpop.f32.mrf.mxu0 }
 0x119   :  { %v615_v51 = vpack.c.bf16 %v549_v47, %v547_v46  ;;  %v394_v55 = vadd.f32 %v393_v49, %v2740_v23  ;;  %v550_v2 = vmax.f32 %v392_v57, 0.0 }
 0x11a   :  { %v395_v54 = vpop.f32.mrf.mxu0 }
 0x11b   :  { %v396_v56 = vadd.f32 %v395_v54, %v2749_v26  ;;  %920 = vmatprep.mubr.bf16.mxu1 %v615_v51  ;;  %v551_v63 = vmax.f32 %v394_v55, 0.0 }
 0x11c   :  { %v397_v58 = vpop.f32.mrf.mxu0  ;;  %921 = vmatmul.mubr.bf16.gmra.mxu1 %v614_v53 }
 0x11d   :  { %v398_v60 = vadd.f32 %v397_v58, %v2740_v23  ;;  %v552_v61 = vmax.f32 %v396_v56, 0.0 }
 0x11e   :  { %v401_v62 = vpop.f32.mrf.mxu0 }
 0x11f   :  { %v553_v1 = vmax.f32 %v398_v60, 0.0  ;;  %v616_v5 = vpack.c.bf16 %v552_v61, %v550_v2  ;;  %v402_v9 = vadd.f32 %v401_v62, %v2749_v26 }
 0x120   :  { %v403_v3 = vpop.f32.mrf.mxu0 }
 0x121   :  { %v617_v4 = vpack.c.bf16 %v553_v1, %v551_v63  ;;  %v404_v7 = vadd.f32 %v403_v3, %v2740_v23  ;;  %v554_v16 = vmax.f32 %v402_v9, 0.0 }
 0x122   :  { %v405_v6 = vpop.f32.mrf.mxu0 }
 0x123   :  { %v406_v8 = vadd.f32 %v405_v6, %v2749_v26  ;;  %930 = vmatprep.mubr.bf16.mxu1 %v617_v4  ;;  %v555_v14 = vmax.f32 %v404_v7, 0.0 }
 0x124   :  { %v407_v10 = vpop.f32.mrf.mxu0  ;;  %931 = vmatmul.mubr.bf16.gmra.mxu1 %v616_v5 }
 0x125   :  { %v408_v11 = vadd.f32 %v407_v10, %v2740_v23  ;;  %v556_v12 = vmax.f32 %v406_v8, 0.0  ;;  %v2379_v8 = vld [vmem:[%s3260_s5 + $0x84] ss:$8 sps:$4 sm:$0xff]   ;;  %v2377_v10 = vld [vmem:[%s3260_s5 + $0x80] ss:$8 sps:$4 sm:$0xff]  }
 0x126   :  { %v411_v13 = vpop.f32.mrf.mxu0  ;;  %1419 = vmatprep.subr.bf16.mxu0 %v2379_v8 }
 0x127   :  { %v557_v15 = vmax.f32 %v408_v11, 0.0  ;;  %v618_v21 = vpack.c.bf16 %v556_v12, %v554_v16  ;;  %v412_v27 = vadd.f32 %v411_v13, %v2749_v26  ;;  %1420 = vmatpush2.bf16.msra.mxu0 %v2377_v10 }
 0x128   :  { %v413_v17 = vpop.f32.mrf.mxu0  ;;  %1861 = vmatprep.subr.bf16.mxu0 %v2421_v0 }
 0x129   :  { %v619_v18 = vpack.c.bf16 %v557_v15, %v555_v14  ;;  %v414_v24 = vadd.f32 %v413_v17, %v2740_v23  ;;  %v558_v34 = vmax.f32 %v412_v27, 0.0 }
 0x12a   :  { %v415_v22 = vpop.f32.mrf.mxu0 }
 0x12b   :  { %v416_v25 = vadd.f32 %v415_v22, %v2749_v26  ;;  %940 = vmatprep.mubr.bf16.mxu1 %v619_v18  ;;  %v559_v32 = vmax.f32 %v414_v24, 0.0 }
 0x12c   :  { %v417_v28 = vpop.f32.mrf.mxu0  ;;  %941 = vmatmul.mubr.bf16.gmra.mxu1 %v618_v21 }
 0x12d   :  { %v418_v29 = vadd.f32 %v417_v28, %v2740_v23  ;;  %v560_v30 = vmax.f32 %v416_v25, 0.0 }
 0x12e   :  { %v421_v31 = vpop.f32.mrf.mxu0 }
 0x12f   :  { %v561_v33 = vmax.f32 %v418_v29, 0.0  ;;  %v620_v37 = vpack.c.bf16 %v560_v30, %v558_v34  ;;  %v422_v41 = vadd.f32 %v421_v31, %v2749_v26 }
 0x130   :  { %v423_v35 = vpop.f32.mrf.mxu0 }
 0x131   :  { %v621_v36 = vpack.c.bf16 %v561_v33, %v559_v32  ;;  %v424_v39 = vadd.f32 %v423_v35, %v2740_v23  ;;  %v562_v48 = vmax.f32 %v422_v41, 0.0 }
 0x132   :  { %v425_v38 = vpop.f32.mrf.mxu0 }
 0x133   :  { %v426_v40 = vadd.f32 %v425_v38, %v2749_v26  ;;  %950 = vmatprep.mubr.bf16.mxu1 %v621_v36  ;;  %v563_v46 = vmax.f32 %v424_v39, 0.0 }
 0x134   :  { %v427_v42 = vpop.f32.mrf.mxu0  ;;  %951 = vmatmul.mubr.bf16.gmra.mxu1 %v620_v37 }
 0x135   :  { %v428_v43 = vadd.f32 %v427_v42, %v2740_v23  ;;  %v564_v44 = vmax.f32 %v426_v40, 0.0 }
 0x136   :  { %v431_v45 = vpop.f32.mrf.mxu0 }
 0x137   :  { %v565_v47 = vmax.f32 %v428_v43, 0.0  ;;  %v622_v51 = vpack.c.bf16 %v564_v44, %v562_v48  ;;  %v432_v55 = vadd.f32 %v431_v45, %v2749_v26 }
 0x138   :  { %v433_v49 = vpop.f32.mrf.mxu0 }
 0x139   :  { %v623_v50 = vpack.c.bf16 %v565_v47, %v563_v46  ;;  %v434_v53 = vadd.f32 %v433_v49, %v2740_v23  ;;  %v566_v62 = vmax.f32 %v432_v55, 0.0 }
 0x13a   :  { %v435_v52 = vpop.f32.mrf.mxu0 }
 0x13b   :  { %v436_v54 = vadd.f32 %v435_v52, %v2749_v26  ;;  %960 = vmatprep.mubr.bf16.mxu1 %v623_v50  ;;  %v567_v60 = vmax.f32 %v434_v53, 0.0 }
 0x13c   :  { %v437_v56 = vpop.f32.mrf.mxu0  ;;  %961 = vmatmul.mubr.bf16.gmra.mxu1 %v622_v51 }
 0x13d   :  { %v438_v57 = vadd.f32 %v437_v56, %v2740_v23  ;;  %v568_v58 = vmax.f32 %v436_v54, 0.0 }
 0x13e   :  { %v441_v59 = vpop.f32.mrf.mxu0 }
 0x13f   :  { %v569_v61 = vmax.f32 %v438_v57, 0.0  ;;  %v624_v2 = vpack.c.bf16 %v568_v58, %v566_v62  ;;  %v442_v6 = vadd.f32 %v441_v59, %v2749_v26 }
 0x140   :  { %v443_v63 = vpop.f32.mrf.mxu0 }
 0x141   :  { %v625_v1 = vpack.c.bf16 %v569_v61, %v567_v60  ;;  %v444_v4 = vadd.f32 %v443_v63, %v2740_v23  ;;  %v570_v15 = vmax.f32 %v442_v6, 0.0 }
 0x142   :  { %v445_v3 = vpop.f32.mrf.mxu0 }
 0x143   :  { %v446_v5 = vadd.f32 %v445_v3, %v2749_v26  ;;  %970 = vmatprep.mubr.bf16.mxu1 %v625_v1  ;;  %v571_v13 = vmax.f32 %v444_v4, 0.0 }
 0x144   :  { %v447_v7 = vpop.f32.mrf.mxu0  ;;  %971 = vmatmul.mubr.bf16.gmra.mxu1 %v624_v2 }
 0x145   :  { %v448_v9 = vadd.f32 %v447_v7, %v2740_v23  ;;  %v572_v11 = vmax.f32 %v446_v5, 0.0 }
 0x146   :  { %v451_v12 = vpop.f32.mrf.mxu0 }
 0x147   :  { %v573_v14 = vmax.f32 %v448_v9, 0.0  ;;  %v626_v18 = vpack.c.bf16 %v572_v11, %v570_v15  ;;  %v452_v25 = vadd.f32 %v451_v12, %v2749_v26 }
 0x148   :  { %v453_v16 = vpop.f32.mrf.mxu0 }
 0x149   :  { %v627_v17 = vpack.c.bf16 %v573_v14, %v571_v13  ;;  %v454_v22 = vadd.f32 %v453_v16, %v2740_v23  ;;  %v574_v33 = vmax.f32 %v452_v25, 0.0 }
 0x14a   :  { %v455_v21 = vpop.f32.mrf.mxu0 }
 0x14b   :  { %v456_v24 = vadd.f32 %v455_v21, %v2749_v26  ;;  %980 = vmatprep.mubr.bf16.mxu1 %v627_v17  ;;  %v575_v31 = vmax.f32 %v454_v22, 0.0 }
 0x14c   :  { %v457_v27 = vpop.f32.mrf.mxu0  ;;  %981 = vmatmul.mubr.bf16.gmra.mxu1 %v626_v18 }
 0x14d   :  { %v458_v28 = vadd.f32 %v457_v27, %v2740_v23  ;;  %v576_v29 = vmax.f32 %v456_v24, 0.0 }
 0x14e   :  { %v461_v30 = vpop.f32.mrf.mxu0 }
 0x14f   :  { %v577_v32 = vmax.f32 %v458_v28, 0.0  ;;  %v628_v36 = vpack.c.bf16 %v576_v29, %v574_v33  ;;  %v462_v40 = vadd.f32 %v461_v30, %v2749_v26 }
 0x150   :  { %v463_v34 = vpop.f32.mrf.mxu0 }
 0x151   :  { %v629_v35 = vpack.c.bf16 %v577_v32, %v575_v31  ;;  %v464_v38 = vadd.f32 %v463_v34, %v2740_v23  ;;  %v578_v47 = vmax.f32 %v462_v40, 0.0 }
 0x152   :  { %v465_v37 = vpop.f32.mrf.mxu0 }
 0x153   :  { %v466_v39 = vadd.f32 %v465_v37, %v2749_v26  ;;  %990 = vmatprep.mubr.bf16.mxu1 %v629_v35  ;;  %v579_v45 = vmax.f32 %v464_v38, 0.0 }
 0x154   :  { %v467_v41 = vpop.f32.mrf.mxu0  ;;  %991 = vmatmul.mubr.bf16.gmra.mxu1 %v628_v36 }
 0x155   :  { %v468_v42 = vadd.f32 %v467_v41, %v2740_v23  ;;  %v580_v43 = vmax.f32 %v466_v39, 0.0 }
 0x156   :  { %v471_v44 = vpop.f32.mrf.mxu0 }
 0x157   :  { %v581_v46 = vmax.f32 %v468_v42, 0.0  ;;  %v630_v50 = vpack.c.bf16 %v580_v43, %v578_v47  ;;  %v472_v54 = vadd.f32 %v471_v44, %v2749_v26 }
 0x158   :  { %v473_v48 = vpop.f32.mrf.mxu0 }
 0x159   :  { %v631_v49 = vpack.c.bf16 %v581_v46, %v579_v45  ;;  %v474_v52 = vadd.f32 %v473_v48, %v2740_v23  ;;  %v582_v61 = vmax.f32 %v472_v54, 0.0 }
 0x15a   :  { %v475_v51 = vpop.f32.mrf.mxu0 }
 0x15b   :  { %v476_v53 = vadd.f32 %v475_v51, %v2749_v26  ;;  %1000 = vmatprep.mubr.bf16.mxu1 %v631_v49  ;;  %v583_v59 = vmax.f32 %v474_v52, 0.0 }
 0x15c   :  { %v477_v55 = vpop.f32.mrf.mxu0  ;;  %1001 = vmatmul.mubr.bf16.gmra.mxu1 %v630_v50 }
 0x15d   :  { %v478_v56 = vadd.f32 %v477_v55, %v2740_v23  ;;  %v584_v57 = vmax.f32 %v476_v53, 0.0 }
 0x15e   :  { %v481_v58 = vpop.f32.mrf.mxu0 }
 0x15f   :  { %v585_v60 = vmax.f32 %v478_v56, 0.0  ;;  %v632_v1 = vpack.c.bf16 %v584_v57, %v582_v61  ;;  %v482_v5 = vadd.f32 %v481_v58, %v2749_v26 }
 0x160   :  { %v483_v62 = vpop.f32.mrf.mxu0 }
 0x161   :  { %v633_v63 = vpack.c.bf16 %v585_v60, %v583_v59  ;;  %v484_v3 = vadd.f32 %v483_v62, %v2740_v23  ;;  %v586_v12 = vmax.f32 %v482_v5, 0.0 }
 0x162   :  { %v485_v2 = vpop.f32.mrf.mxu0 }
 0x163   :  { %v486_v4 = vadd.f32 %v485_v2, %v2749_v26  ;;  %1010 = vmatprep.mubr.bf16.mxu1 %v633_v63  ;;  %v587_v10 = vmax.f32 %v484_v3, 0.0 }
 0x164   :  { %v487_v6 = vpop.f32.mrf.mxu0  ;;  %1011 = vmatmul.mubr.bf16.gmra.mxu1 %v632_v1 }
 0x165   :  { %v488_v7 = vadd.f32 %v487_v6, %v2740_v23  ;;  %v588_v8 = vmax.f32 %v486_v4, 0.0 }
 0x166   :  { %v491_v9 = vpop.f32.mrf.mxu0 }
 0x167   :  { %v589_v11 = vmax.f32 %v488_v7, 0.0  ;;  %v634_v15 = vpack.c.bf16 %v588_v8, %v586_v12  ;;  %v492_v21 = vadd.f32 %v491_v9, %v2749_v26  ;;  %v2381_v12 = vld [vmem:[#allocation2 + $0x30] sm:$0xff]  }
 0x168   :  { %v493_v13 = vpop.f32.mrf.mxu0 }
 0x169   :  { %v635_v14 = vpack.c.bf16 %v589_v11, %v587_v10  ;;  %v494_v17 = vadd.f32 %v493_v13, %v2740_v23  ;;  %v590_v30 = vmax.f32 %v492_v21, 0.0  ;;  %v2380_v11 = vld [vmem:[#allocation2 + $0x38] sm:$0xff]  }
 0x16a   :  { %v495_v16 = vpop.f32.mrf.mxu0  ;;  %2221 = vmatpush1.bf16.msra.mxu1 %v2380_v11  ;;  %v2889_v13 = vld [vmem:[#allocation2 + $0x18] sm:$0xff]  }
 0x16b   :  { %v496_v18 = vadd.f32 %v495_v16, %v2749_v26  ;;  %1020 = vmatprep.mubr.bf16.mxu1 %v635_v14  ;;  %v591_v28 = vmax.f32 %v494_v17, 0.0  ;;  %2206 = vmatprep.subr.bf16.mxu1 %v2421_v0  ;;  %v676_v14 = vld [vmem:[%s3259_s4] sm:$0x3] }
 0x16c   :  { %v497_v22 = vpop.f32.mrf.mxu0  ;;  %1021 = vmatmul.mubr.bf16.gmra.mxu1 %v634_v15  ;;  %v2897_v16 = vrot.slane %v676_v14, %v2732_v19  ;;  %v2900_v17 = vrot.slane %v676_v14, %v2734_v20 }
 0x16d   :  { %v498_v24 = vadd.f32 %v497_v22, %v2740_v23  ;;  %v592_v25 = vmax.f32 %v496_v18, 0.0 }
 0x16e   :  { %v501_v27 = vpop.f32.mrf.mxu0  ;;  %2222 = vmatpush1.bf16.msra.mxu1 %v2381_v12 }
 0x16f   :  { %v593_v29 = vmax.f32 %v498_v24, 0.0  ;;  %v636_v33 = vpack.c.bf16 %v592_v25, %v590_v30  ;;  %v502_v37 = vadd.f32 %v501_v27, %v2749_v26  ;;  %2207 = vmatprep.subr.bf16.mxu1 %v2421_v0 }
 0x170   :  { %v503_v31 = vpop.f32.mrf.mxu0 }
 0x171   :  { %v637_v32 = vpack.c.bf16 %v593_v29, %v591_v28  ;;  %v504_v35 = vadd.f32 %v503_v31, %v2740_v23  ;;  %v594_v44 = vmax.f32 %v502_v37, 0.0 }
 0x172   :  { %v505_v34 = vpop.f32.mrf.mxu0 }
 0x173   :  { %v506_v36 = vadd.f32 %v505_v34, %v2749_v26  ;;  %1030 = vmatprep.mubr.bf16.mxu1 %v637_v32  ;;  %v595_v42 = vmax.f32 %v504_v35, 0.0 }
 0x174   :  { %v507_v38 = vpop.f32.mrf.mxu0  ;;  %1031 = vmatmul.mubr.bf16.gmra.mxu1 %v636_v33  ;;  %v2906_v33 = vld [vmem:[#allocation2 + $0x10] sm:$0xff]  }
 0x175   :  { %v508_v39 = vadd.f32 %v507_v38, %v2740_v23  ;;  %v596_v40 = vmax.f32 %v506_v36, 0.0 }
 0x176   :  { %v511_v41 = vpop.f32.mrf.mxu0 }
 0x177   :  { %v597_v43 = vmax.f32 %v508_v39, 0.0  ;;  %v638_v47 = vpack.c.bf16 %v596_v40, %v594_v44  ;;  %v512_v51 = vadd.f32 %v511_v41, %v2749_v26 }
 0x178   :  { %v513_v45 = vpop.f32.mrf.mxu0 }
 0x179   :  { %v639_v46 = vpack.c.bf16 %v597_v43, %v595_v42  ;;  %v514_v49 = vadd.f32 %v513_v45, %v2740_v23  ;;  %v598_v58 = vmax.f32 %v512_v51, 0.0 }
 0x17a   :  { %v515_v48 = vpop.f32.mrf.mxu0 }
 0x17b   :  { %v516_v50 = vadd.f32 %v515_v48, %v2749_v26  ;;  %1040 = vmatprep.mubr.bf16.mxu1 %v639_v46  ;;  %v599_v56 = vmax.f32 %v514_v49, 0.0  ;;  %v2915_v48 = vld [vmem:[#allocation2 + $0x8] sm:$0xff]  }
 0x17c   :  { %v517_v52 = vpop.f32.mrf.mxu0  ;;  %1041 = vmatmul.mubr.bf16.gmra.mxu1 %v638_v47 }
 0x17d   :  { %v518_v53 = vadd.f32 %v517_v52, %v2740_v23  ;;  %v600_v54 = vmax.f32 %v516_v50, 0.0 }
 0x17e   :  { %v521_v55 = vpop.f32.mrf.mxu0 }
 0x17f   :  { %v601_v57 = vmax.f32 %v518_v53, 0.0  ;;  %v640_v61 = vpack.c.bf16 %v600_v54, %v598_v58  ;;  %v522_v2 = vadd.f32 %v521_v55, %v2749_v26 }
 0x180   :  { %v523_v59 = vpop.f32.mrf.mxu0 }
 0x181   :  { %v641_v60 = vpack.c.bf16 %v601_v57, %v599_v56  ;;  %v524_v63 = vadd.f32 %v523_v59, %v2740_v23  ;;  %v602_v8 = vmax.f32 %v522_v2, 0.0 }
 0x182   :  { %v525_v62 = vpop.f32.mrf.mxu0 }
 0x183   :  { %v526_v1 = vadd.f32 %v525_v62, %v2749_v26  ;;  %1050 = vmatprep.mubr.bf16.mxu1 %v641_v60  ;;  %v603_v6 = vmax.f32 %v524_v63, 0.0  ;;  %v2382_v26 = vld [vmem:[#allocation2 + $0x28] sm:$0xff]  }
 0x184   :  { %v527_v3 = vpop.f32.mrf.mxu0  ;;  %1051 = vmatmul.mubr.bf16.gmra.mxu1 %v640_v61 }
 0x185   :  { %v528_v4 = vadd.f32 %v527_v3, %v2740_v23  ;;  %v604_v5 = vmax.f32 %v526_v1, 0.0  ;;  %2223 = vmatpush1.bf16.msra.mxu1 %v2382_v26  ;;  %v2885_v23 = vld [vmem:[#allocation2 + $0x20] sm:$0xff]  }
 0x186   :  { %2208 = vmatprep.subr.bf16.mxu1 %v2421_v0  ;;  %v2387_v3 = vld [vmem:[#allocation2] sm:$0xff]  }
 0x187   :  { %v605_v7 = vmax.f32 %v528_v4, 0.0  ;;  %v642_v10 = vpack.c.bf16 %v604_v5, %v602_v8 }
 0x189   :  { %v643_v9 = vpack.c.bf16 %v605_v7, %v603_v6  ;;  %2224 = vmatpush1.bf16.msra.mxu1 %v2885_v23 }
 0x18a   :  { %2209 = vmatprep.subr.bf16.mxu1 %v2421_v0 }
 0x18b   :  { %1060 = vmatprep.mubr.bf16.mxu1 %v643_v9 }
 0x18c   :  { %1061 = vmatmul.mubr.bf16.gmra.mxu1 %v642_v10 }
 0x18d   :  { %2225 = vmatpush1.bf16.msra.mxu1 %v2889_v13 }
 0x18e   :  { %2210 = vmatprep.subr.bf16.mxu1 %v2421_v0 }
 0x191   :  { %2226 = vmatpush1.bf16.msra.mxu1 %v2906_v33 }
 0x192   :  { %2211 = vmatprep.subr.bf16.mxu1 %v2421_v0 }
 0x195   :  { %2227 = vmatpush1.bf16.msra.mxu1 %v2915_v48 }
 0x196   :  { %2212 = vmatprep.subr.bf16.mxu1 %v2421_v0 }
 0x199   :  { %2228 = vmatpush1.bf16.msra.mxu1 %v2387_v3 }
 0x19a   :  { %2213 = vmatprep.subr.bf16.mxu1 %v2421_v0 }
 0x1bc   :  { %v882_v15 = vpop.f32.mrf.mxu1 }
 0x1bd   :  { %v883_v25 = vadd.f32 %v882_v15, %v2900_v17 }
 0x1be   :  { %v884_v18 = vpop.f32.mrf.mxu1 }
 0x1bf   :  { %v885_v22 = vadd.f32 %v884_v18, %v2897_v16  ;;  %v1071_v34 = vmax.f32 %v883_v25, 0.0 }
 0x1c0   :  { %v886_v21 = vpop.f32.mrf.mxu1 }
 0x1c1   :  { %v887_v24 = vadd.f32 %v886_v21, %v2900_v17  ;;  %v1072_v31 = vmax.f32 %v885_v22, 0.0  ;;  %v2389_v22 = vld [vmem:[#allocation2 + $0x70] sm:$0xff]  }
 0x1c2   :  { %v888_v27 = vpop.f32.mrf.mxu1 }
 0x1c3   :  { %v889_v28 = vadd.f32 %v888_v27, %v2897_v16  ;;  %v1073_v29 = vmax.f32 %v887_v24, 0.0 }
 0x1c4   :  { %v892_v30 = vpop.f32.mrf.mxu1 }
 0x1c5   :  { %v1074_v32 = vmax.f32 %v889_v28, 0.0  ;;  %v1147_v37 = vpack.c.bf16 %v1073_v29, %v1071_v34  ;;  %v893_v41 = vadd.f32 %v892_v30, %v2900_v17 }
 0x1c6   :  { %v894_v35 = vpop.f32.mrf.mxu1 }
 0x1c7   :  { %v1148_v36 = vpack.c.bf16 %v1074_v32, %v1072_v31  ;;  %v895_v39 = vadd.f32 %v894_v35, %v2897_v16  ;;  %v1075_v49 = vmax.f32 %v893_v41, 0.0  ;;  %v2390_v31 = vld [vmem:[#allocation2 + $0x68] sm:$0xff]  }
 0x1c8   :  { %v896_v38 = vpop.f32.mrf.mxu1 }
 0x1c9   :  { %v897_v40 = vadd.f32 %v896_v38, %v2900_v17  ;;  %1421 = vmatprep.mubr.bf16.mxu0 %v1148_v36  ;;  %v1076_v46 = vmax.f32 %v895_v39, 0.0  ;;  %v2391_v39 = vld [vmem:[#allocation2 + $0x60] sm:$0xff]  }
 0x1ca   :  { %v898_v42 = vpop.f32.mrf.mxu1  ;;  %1422 = vmatmul.mubr.bf16.vlgmr.msra.gmra.mxu0 %v1147_v37 }
 0x1cb   :  { %v899_v43 = vadd.f32 %v898_v42, %v2897_v16  ;;  %1862 = vmatpush1.bf16.msra.mxu0 %v2380_v11  ;;  %v1077_v44 = vmax.f32 %v897_v40, 0.0  ;;  %v2388_v11 = vld [vmem:[#allocation2 + $0x78] sm:$0xff]  }
 0x1cc   :  { %v902_v45 = vpop.f32.mrf.mxu1  ;;  %1863 = vmatprep.subr.bf16.mxu0 %v2421_v0  ;;  %2229 = vmatpush2.bf16.msra.mxu1 %v2388_v11 }
 0x1cd   :  { %v1078_v47 = vmax.f32 %v899_v43, 0.0  ;;  %v1149_v52 = vpack.c.bf16 %v1077_v44, %v1075_v49  ;;  %v903_v56 = vadd.f32 %v902_v45, %v2900_v17  ;;  %2214 = vmatprep.subr.bf16.mxu1 %v2421_v0 }
 0x1ce   :  { %v904_v50 = vpop.f32.mrf.mxu1 }
 0x1cf   :  { %v1150_v51 = vpack.c.bf16 %v1078_v47, %v1076_v46  ;;  %1864 = vmatpush1.bf16.msra.mxu0 %v2381_v12  ;;  %v905_v54 = vadd.f32 %v904_v50, %v2897_v16  ;;  %v1079_v63 = vmax.f32 %v903_v56, 0.0  ;;  %v2392_v47 = vld [vmem:[#allocation2 + $0x58] sm:$0xff]  }
 0x1d0   :  { %v906_v53 = vpop.f32.mrf.mxu1  ;;  %1865 = vmatprep.subr.bf16.mxu0 %v2421_v0  ;;  %2230 = vmatpush2.bf16.msra.mxu1 %v2389_v22 }
 0x1d1   :  { %v907_v55 = vadd.f32 %v906_v53, %v2900_v17  ;;  %1431 = vmatprep.mubr.bf16.mxu0 %v1150_v51  ;;  %v1080_v61 = vmax.f32 %v905_v54, 0.0  ;;  %2215 = vmatprep.subr.bf16.mxu1 %v2421_v0 }
 0x1d2   :  { %v908_v57 = vpop.f32.mrf.mxu1  ;;  %1432 = vmatmul.mubr.bf16.gmra.mxu0 %v1149_v52 }
 0x1d3   :  { %v909_v58 = vadd.f32 %v908_v57, %v2897_v16  ;;  %1866 = vmatpush1.bf16.msra.mxu0 %v2382_v26  ;;  %v1081_v59 = vmax.f32 %v907_v55, 0.0 }
 0x1d4   :  { %v912_v60 = vpop.f32.mrf.mxu1  ;;  %1867 = vmatprep.subr.bf16.mxu0 %v2421_v0  ;;  %2231 = vmatpush2.bf16.msra.mxu1 %v2390_v31 }
 0x1d5   :  { %v1082_v62 = vmax.f32 %v909_v58, 0.0  ;;  %v1151_v4 = vpack.c.bf16 %v1081_v59, %v1079_v63  ;;  %v913_v8 = vadd.f32 %v912_v60, %v2900_v17  ;;  %2216 = vmatprep.subr.bf16.mxu1 %v2421_v0 }
 0x1d6   :  { %v914_v1 = vpop.f32.mrf.mxu1 }
 0x1d7   :  { %v1152_v2 = vpack.c.bf16 %v1082_v62, %v1080_v61  ;;  %1868 = vmatpush1.bf16.msra.mxu0 %v2885_v23  ;;  %v915_v6 = vadd.f32 %v914_v1, %v2897_v16  ;;  %v1083_v15 = vmax.f32 %v913_v8, 0.0 }
 0x1d8   :  { %v916_v5 = vpop.f32.mrf.mxu1  ;;  %1869 = vmatprep.subr.bf16.mxu0 %v2421_v0  ;;  %2232 = vmatpush2.bf16.msra.mxu1 %v2391_v39 }
 0x1d9   :  { %v917_v7 = vadd.f32 %v916_v5, %v2900_v17  ;;  %1441 = vmatprep.mubr.bf16.mxu0 %v1152_v2  ;;  %v1084_v23 = vmax.f32 %v915_v6, 0.0  ;;  %2217 = vmatprep.subr.bf16.mxu1 %v2421_v0 }
 0x1da   :  { %v918_v9 = vpop.f32.mrf.mxu1  ;;  %1442 = vmatmul.mubr.bf16.gmra.mxu0 %v1151_v4 }
 0x1db   :  { %v919_v10 = vadd.f32 %v918_v9, %v2897_v16  ;;  %1870 = vmatpush1.bf16.msra.mxu0 %v2889_v13  ;;  %v1085_v12 = vmax.f32 %v917_v7, 0.0 }
 0x1dc   :  { %v922_v26 = vpop.f32.mrf.mxu1  ;;  %1871 = vmatprep.subr.bf16.mxu0 %v2421_v0  ;;  %2233 = vmatpush2.bf16.msra.mxu1 %v2392_v47 }
 0x1dd   :  { %v1086_v14 = vmax.f32 %v919_v10, 0.0  ;;  %v1153_v24 = vpack.c.bf16 %v1085_v12, %v1083_v15  ;;  %v923_v28 = vadd.f32 %v922_v26, %v2900_v17  ;;  %2218 = vmatprep.subr.bf16.mxu1 %v2421_v0 }
 0x1de   :  { %v924_v18 = vpop.f32.mrf.mxu1 }
 0x1df   :  { %v1154_v21 = vpack.c.bf16 %v1086_v14, %v1084_v23  ;;  %1872 = vmatpush1.bf16.msra.mxu0 %v2906_v33  ;;  %v925_v13 = vadd.f32 %v924_v18, %v2897_v16  ;;  %v1087_v36 = vmax.f32 %v923_v28, 0.0 }
 0x1e0   :  { %v926_v25 = vpop.f32.mrf.mxu1  ;;  %1873 = vmatprep.subr.bf16.mxu0 %v2421_v0 }
 0x1e1   :  { %v927_v27 = vadd.f32 %v926_v25, %v2900_v17  ;;  %1451 = vmatprep.mubr.bf16.mxu0 %v1154_v21  ;;  %v1088_v34 = vmax.f32 %v925_v13, 0.0 }
 0x1e2   :  { %v928_v29 = vpop.f32.mrf.mxu1  ;;  %1452 = vmatmul.mubr.bf16.gmra.mxu0 %v1153_v24 }
 0x1e3   :  { %v929_v30 = vadd.f32 %v928_v29, %v2897_v16  ;;  %1874 = vmatpush1.bf16.msra.mxu0 %v2915_v48  ;;  %v1089_v32 = vmax.f32 %v927_v27, 0.0 }
 0x1e4   :  { %v932_v33 = vpop.f32.mrf.mxu1  ;;  %1875 = vmatprep.subr.bf16.mxu0 %v2421_v0 }
 0x1e5   :  { %v1090_v35 = vmax.f32 %v929_v30, 0.0  ;;  %v1155_v40 = vpack.c.bf16 %v1089_v32, %v1087_v36  ;;  %v933_v44 = vadd.f32 %v932_v33, %v2900_v17 }
 0x1e6   :  { %v934_v37 = vpop.f32.mrf.mxu1 }
 0x1e7   :  { %v1156_v38 = vpack.c.bf16 %v1090_v35, %v1088_v34  ;;  %1876 = vmatpush1.bf16.msra.mxu0 %v2387_v3  ;;  %v935_v42 = vadd.f32 %v934_v37, %v2897_v16  ;;  %v1091_v52 = vmax.f32 %v933_v44, 0.0 }
 0x1e8   :  { %v936_v41 = vpop.f32.mrf.mxu1  ;;  %1877 = vmatprep.subr.bf16.mxu0 %v2421_v0 }
 0x1e9   :  { %v937_v43 = vadd.f32 %v936_v41, %v2900_v17  ;;  %1461 = vmatprep.mubr.bf16.mxu0 %v1156_v38  ;;  %v1092_v50 = vmax.f32 %v935_v42, 0.0 }
 0x1ea   :  { %v938_v45 = vpop.f32.mrf.mxu1  ;;  %1462 = vmatmul.mubr.bf16.gmra.mxu0 %v1155_v40 }
 0x1eb   :  { %v939_v46 = vadd.f32 %v938_v45, %v2897_v16  ;;  %1878 = vmatpush2.bf16.msra.mxu0 %v2388_v11  ;;  %v1093_v48 = vmax.f32 %v937_v43, 0.0  ;;  %v2393_v45 = vld [vmem:[#allocation2 + $0x50] sm:$0xff]  }
 0x1ec   :  { %v942_v49 = vpop.f32.mrf.mxu1  ;;  %1879 = vmatprep.subr.bf16.mxu0 %v2421_v0  ;;  %2234 = vmatpush2.bf16.msra.mxu1 %v2393_v45 }
 0x1ed   :  { %v1094_v51 = vmax.f32 %v939_v46, 0.0  ;;  %v1157_v55 = vpack.c.bf16 %v1093_v48, %v1091_v52  ;;  %v943_v59 = vadd.f32 %v942_v49, %v2900_v17  ;;  %2219 = vmatprep.subr.bf16.mxu1 %v2421_v0 }
 0x1ee   :  { %v944_v53 = vpop.f32.mrf.mxu1 }
 0x1ef   :  { %v1158_v54 = vpack.c.bf16 %v1094_v51, %v1092_v50  ;;  %1880 = vmatpush2.bf16.msra.mxu0 %v2389_v22  ;;  %v945_v57 = vadd.f32 %v944_v53, %v2897_v16  ;;  %v1095_v3 = vmax.f32 %v943_v59, 0.0  ;;  %v2394_v53 = vld [vmem:[#allocation2 + $0x48] sm:$0xff]  }
 0x1f0   :  { %v946_v56 = vpop.f32.mrf.mxu1  ;;  %1881 = vmatprep.subr.bf16.mxu0 %v2421_v0  ;;  %2235 = vmatpush2.bf16.msra.mxu1 %v2394_v53 }
 0x1f1   :  { %v947_v58 = vadd.f32 %v946_v56, %v2900_v17  ;;  %1471 = vmatprep.mubr.bf16.mxu0 %v1158_v54  ;;  %v1096_v1 = vmax.f32 %v945_v57, 0.0  ;;  %2220 = vmatprep.subr.bf16.mxu1 %v2421_v0 }
 0x1f2   :  { %v948_v60 = vpop.f32.mrf.mxu1  ;;  %1472 = vmatmul.mubr.bf16.gmra.mxu0 %v1157_v55 }
 0x1f3   :  { %v949_v61 = vadd.f32 %v948_v60, %v2897_v16  ;;  %1882 = vmatpush2.bf16.msra.mxu0 %v2390_v31  ;;  %v1097_v62 = vmax.f32 %v947_v58, 0.0 }
 0x1f4   :  { %v952_v63 = vpop.f32.mrf.mxu1  ;;  %1883 = vmatprep.subr.bf16.mxu0 %v2421_v0 }
 0x1f5   :  { %v1098_v2 = vmax.f32 %v949_v61, 0.0  ;;  %v1159_v6 = vpack.c.bf16 %v1097_v62, %v1095_v3  ;;  %v953_v10 = vadd.f32 %v952_v63, %v2900_v17  ;;  %v2395_v61 = vld [vmem:[#allocation2 + $0x40] sm:$0xff]  }
 0x1f6   :  { %v954_v4 = vpop.f32.mrf.mxu1  ;;  %2236 = vmatpush2.bf16.msra.mxu1 %v2395_v61 }
 0x1f7   :  { %v1160_v5 = vpack.c.bf16 %v1098_v2, %v1096_v1  ;;  %1884 = vmatpush2.bf16.msra.mxu0 %v2391_v39  ;;  %v955_v8 = vadd.f32 %v954_v4, %v2897_v16  ;;  %v1099_v18 = vmax.f32 %v953_v10, 0.0 }
 0x1f8   :  { %v956_v7 = vpop.f32.mrf.mxu1  ;;  %1885 = vmatprep.subr.bf16.mxu0 %v2421_v0 }
 0x1f9   :  { %v957_v9 = vadd.f32 %v956_v7, %v2900_v17  ;;  %1481 = vmatprep.mubr.bf16.mxu0 %v1160_v5  ;;  %v1100_v14 = vmax.f32 %v955_v8, 0.0 }
 0x1fa   :  { %v958_v11 = vpop.f32.mrf.mxu1  ;;  %1482 = vmatmul.mubr.bf16.gmra.mxu0 %v1159_v6 }
 0x1fb   :  { %v959_v12 = vadd.f32 %v958_v11, %v2897_v16  ;;  %1886 = vmatpush2.bf16.msra.mxu0 %v2392_v47  ;;  %v1101_v26 = vmax.f32 %v957_v9, 0.0 }
 0x1fc   :  { %v962_v23 = vpop.f32.mrf.mxu1  ;;  %1887 = vmatprep.subr.bf16.mxu0 %v2421_v0 }
 0x1fd   :  { %v1102_v15 = vmax.f32 %v959_v12, 0.0  ;;  %v1161_v24 = vpack.c.bf16 %v1101_v26, %v1099_v18  ;;  %v963_v28 = vadd.f32 %v962_v23, %v2900_v17 }
 0x1fe   :  { %v964_v21 = vpop.f32.mrf.mxu1 }
 0x1ff   :  { %v1162_v22 = vpack.c.bf16 %v1102_v15, %v1100_v14  ;;  %v965_v13 = vadd.f32 %v964_v21, %v2897_v16  ;;  %v1103_v35 = vmax.f32 %v963_v28, 0.0  ;;  %1888 = vmatpush2.bf16.msra.mxu0 %v2393_v45 }
 0x200   :  { %v966_v25 = vpop.f32.mrf.mxu1  ;;  %1889 = vmatprep.subr.bf16.mxu0 %v2421_v0 }
 0x201   :  { %v967_v27 = vadd.f32 %v966_v25, %v2900_v17  ;;  %1491 = vmatprep.mubr.bf16.mxu0 %v1162_v22  ;;  %v1104_v33 = vmax.f32 %v965_v13, 0.0 }
 0x202   :  { %v968_v29 = vpop.f32.mrf.mxu1  ;;  %1492 = vmatmul.mubr.bf16.gmra.mxu0 %v1161_v24 }
 0x203   :  { %v969_v30 = vadd.f32 %v968_v29, %v2897_v16  ;;  %v1105_v31 = vmax.f32 %v967_v27, 0.0  ;;  %1890 = vmatpush2.bf16.msra.mxu0 %v2394_v53 }
 0x204   :  { %v972_v32 = vpop.f32.mrf.mxu1  ;;  %1891 = vmatprep.subr.bf16.mxu0 %v2421_v0 }
 0x205   :  { %v1106_v34 = vmax.f32 %v969_v30, 0.0  ;;  %v1163_v38 = vpack.c.bf16 %v1105_v31, %v1103_v35  ;;  %v973_v42 = vadd.f32 %v972_v32, %v2900_v17 }
 0x206   :  { %v974_v36 = vpop.f32.mrf.mxu1 }
 0x207   :  { %v1164_v37 = vpack.c.bf16 %v1106_v34, %v1104_v33  ;;  %v975_v40 = vadd.f32 %v974_v36, %v2897_v16  ;;  %v1107_v50 = vmax.f32 %v973_v42, 0.0  ;;  %1892 = vmatpush2.bf16.msra.mxu0 %v2395_v61 }
 0x208   :  { %v976_v39 = vpop.f32.mrf.mxu1 }
 0x209   :  { %v977_v41 = vadd.f32 %v976_v39, %v2900_v17  ;;  %1501 = vmatprep.mubr.bf16.mxu0 %v1164_v37  ;;  %v1108_v48 = vmax.f32 %v975_v40, 0.0 }
 0x20a   :  { %v978_v43 = vpop.f32.mrf.mxu1  ;;  %1502 = vmatmul.mubr.bf16.gmra.mxu0 %v1163_v38 }
 0x20b   :  { %v979_v44 = vadd.f32 %v978_v43, %v2897_v16  ;;  %v1109_v46 = vmax.f32 %v977_v41, 0.0 }
 0x20c   :  { %v982_v47 = vpop.f32.mrf.mxu1 }
 0x20d   :  { %v1110_v49 = vmax.f32 %v979_v44, 0.0  ;;  %v1165_v54 = vpack.c.bf16 %v1109_v46, %v1107_v50  ;;  %v983_v58 = vadd.f32 %v982_v47, %v2900_v17 }
 0x20e   :  { %v984_v51 = vpop.f32.mrf.mxu1 }
 0x20f   :  { %v1166_v52 = vpack.c.bf16 %v1110_v49, %v1108_v48  ;;  %v985_v56 = vadd.f32 %v984_v51, %v2897_v16  ;;  %v1111_v3 = vmax.f32 %v983_v58, 0.0 }
 0x210   :  { %v986_v55 = vpop.f32.mrf.mxu1 }
 0x211   :  { %v987_v57 = vadd.f32 %v986_v55, %v2900_v17  ;;  %1511 = vmatprep.mubr.bf16.mxu0 %v1166_v52  ;;  %v1112_v1 = vmax.f32 %v985_v56, 0.0 }
 0x212   :  { %v988_v59 = vpop.f32.mrf.mxu1  ;;  %1512 = vmatmul.mubr.bf16.gmra.mxu0 %v1165_v54 }
 0x213   :  { %v989_v60 = vadd.f32 %v988_v59, %v2897_v16  ;;  %v1113_v62 = vmax.f32 %v987_v57, 0.0 }
 0x214   :  { %v992_v63 = vpop.f32.mrf.mxu1 }
 0x215   :  { %v1114_v2 = vmax.f32 %v989_v60, 0.0  ;;  %v1167_v6 = vpack.c.bf16 %v1113_v62, %v1111_v3  ;;  %v993_v10 = vadd.f32 %v992_v63, %v2900_v17 }
 0x216   :  { %v994_v4 = vpop.f32.mrf.mxu1 }
 0x217   :  { %v1168_v5 = vpack.c.bf16 %v1114_v2, %v1112_v1  ;;  %v995_v8 = vadd.f32 %v994_v4, %v2897_v16  ;;  %v1115_v15 = vmax.f32 %v993_v10, 0.0 }
 0x218   :  { %v996_v7 = vpop.f32.mrf.mxu1 }
 0x219   :  { %v997_v9 = vadd.f32 %v996_v7, %v2900_v17  ;;  %1521 = vmatprep.mubr.bf16.mxu0 %v1168_v5  ;;  %v1116_v23 = vmax.f32 %v995_v8, 0.0 }
 0x21a   :  { %v998_v11 = vpop.f32.mrf.mxu1  ;;  %1522 = vmatmul.mubr.bf16.gmra.mxu0 %v1167_v6 }
 0x21b   :  { %v999_v0 = vadd.f32 %v998_v11, %v2897_v16  ;;  %v1117_v12 = vmax.f32 %v997_v9, 0.0 }
 0x21c   :  { %v1002_v26 = vpop.f32.mrf.mxu1 }
 0x21d   :  { %v1118_v14 = vmax.f32 %v999_v0, 0.0  ;;  %v1169_v22 = vpack.c.bf16 %v1117_v12, %v1115_v15  ;;  %v1003_v27 = vadd.f32 %v1002_v26, %v2900_v17 }
 0x21e   :  { %v1004_v18 = vpop.f32.mrf.mxu1 }
 0x21f   :  { %v1170_v21 = vpack.c.bf16 %v1118_v14, %v1116_v23  ;;  %v1005_v25 = vadd.f32 %v1004_v18, %v2897_v16  ;;  %v1119_v34 = vmax.f32 %v1003_v27, 0.0 }
 0x220   :  { %v1006_v24 = vpop.f32.mrf.mxu1 }
 0x221   :  { %v1007_v13 = vadd.f32 %v1006_v24, %v2900_v17  ;;  %1531 = vmatprep.mubr.bf16.mxu0 %v1170_v21  ;;  %v1120_v32 = vmax.f32 %v1005_v25, 0.0 }
 0x222   :  { %v1008_v28 = vpop.f32.mrf.mxu1  ;;  %1532 = vmatmul.mubr.bf16.gmra.mxu0 %v1169_v22 }
 0x223   :  { %v1009_v29 = vadd.f32 %v1008_v28, %v2897_v16  ;;  %v1121_v30 = vmax.f32 %v1007_v13, 0.0 }
 0x224   :  { %v1012_v31 = vpop.f32.mrf.mxu1 }
 0x225   :  { %v1122_v33 = vmax.f32 %v1009_v29, 0.0  ;;  %v1171_v37 = vpack.c.bf16 %v1121_v30, %v1119_v34  ;;  %v1013_v41 = vadd.f32 %v1012_v31, %v2900_v17 }
 0x226   :  { %v1014_v35 = vpop.f32.mrf.mxu1 }
 0x227   :  { %v1172_v36 = vpack.c.bf16 %v1122_v33, %v1120_v32  ;;  %v1015_v39 = vadd.f32 %v1014_v35, %v2897_v16  ;;  %v1123_v48 = vmax.f32 %v1013_v41, 0.0 }
 0x228   :  { %v1016_v38 = vpop.f32.mrf.mxu1 }
 0x229   :  { %v1017_v40 = vadd.f32 %v1016_v38, %v2900_v17  ;;  %1541 = vmatprep.mubr.bf16.mxu0 %v1172_v36  ;;  %v1124_v46 = vmax.f32 %v1015_v39, 0.0 }
 0x22a   :  { %v1018_v42 = vpop.f32.mrf.mxu1  ;;  %1542 = vmatmul.mubr.bf16.gmra.mxu0 %v1171_v37 }
 0x22b   :  { %v1019_v43 = vadd.f32 %v1018_v42, %v2897_v16  ;;  %v1125_v44 = vmax.f32 %v1017_v40, 0.0 }
 0x22c   :  { %v1022_v45 = vpop.f32.mrf.mxu1 }
 0x22d   :  { %v1126_v47 = vmax.f32 %v1019_v43, 0.0  ;;  %v1173_v51 = vpack.c.bf16 %v1125_v44, %v1123_v48  ;;  %v1023_v55 = vadd.f32 %v1022_v45, %v2900_v17 }
 0x22e   :  { %v1024_v49 = vpop.f32.mrf.mxu1 }
 0x22f   :  { %v1174_v50 = vpack.c.bf16 %v1126_v47, %v1124_v46  ;;  %v1025_v53 = vadd.f32 %v1024_v49, %v2897_v16  ;;  %v1127_v62 = vmax.f32 %v1023_v55, 0.0 }
 0x230   :  { %v1026_v52 = vpop.f32.mrf.mxu1 }
 0x231   :  { %v1027_v54 = vadd.f32 %v1026_v52, %v2900_v17  ;;  %1551 = vmatprep.mubr.bf16.mxu0 %v1174_v50  ;;  %v1128_v60 = vmax.f32 %v1025_v53, 0.0 }
 0x232   :  { %v1028_v56 = vpop.f32.mrf.mxu1  ;;  %1552 = vmatmul.mubr.bf16.gmra.mxu0 %v1173_v51 }
 0x233   :  { %v1029_v57 = vadd.f32 %v1028_v56, %v2897_v16  ;;  %v1129_v58 = vmax.f32 %v1027_v54, 0.0 }
 0x234   :  { %v1032_v59 = vpop.f32.mrf.mxu1 }
 0x235   :  { %v1130_v61 = vmax.f32 %v1029_v57, 0.0  ;;  %v1175_v2 = vpack.c.bf16 %v1129_v58, %v1127_v62  ;;  %v1033_v6 = vadd.f32 %v1032_v59, %v2900_v17 }
 0x236   :  { %v1034_v63 = vpop.f32.mrf.mxu1 }
 0x237   :  { %v1176_v1 = vpack.c.bf16 %v1130_v61, %v1128_v60  ;;  %v1035_v4 = vadd.f32 %v1034_v63, %v2897_v16  ;;  %v1131_v12 = vmax.f32 %v1033_v6, 0.0  ;;  %v1217_v60 = vld [vmem:[%s3261_s6] sm:$0x3] }
 0x238   :  { %v1036_v3 = vpop.f32.mrf.mxu1  ;;  %v3017_v62 = vrot.slane %v1217_v60, %v2732_v19 }
 0x239   :  { %v1037_v5 = vadd.f32 %v1036_v3, %v2900_v17  ;;  %1561 = vmatprep.mubr.bf16.mxu0 %v1176_v1  ;;  %v1132_v11 = vmax.f32 %v1035_v4, 0.0 }
 0x23a   :  { %v1038_v7 = vpop.f32.mrf.mxu1  ;;  %1562 = vmatmul.mubr.bf16.gmra.mxu0 %v1175_v2 }
 0x23b   :  { %v1039_v8 = vadd.f32 %v1038_v7, %v2897_v16  ;;  %v1133_v9 = vmax.f32 %v1037_v5, 0.0 }
 0x23c   :  { %v1042_v10 = vpop.f32.mrf.mxu1 }
 0x23d   :  { %v1134_v0 = vmax.f32 %v1039_v8, 0.0  ;;  %v1177_v14 = vpack.c.bf16 %v1133_v9, %v1131_v12  ;;  %v1043_v22 = vadd.f32 %v1042_v10, %v2900_v17 }
 0x23e   :  { %v1044_v26 = vpop.f32.mrf.mxu1 }
 0x23f   :  { %v1178_v23 = vpack.c.bf16 %v1134_v0, %v1132_v11  ;;  %v1045_v18 = vadd.f32 %v1044_v26, %v2897_v16  ;;  %v1135_v30 = vmax.f32 %v1043_v22, 0.0 }
 0x240   :  { %v1046_v15 = vpop.f32.mrf.mxu1 }
 0x241   :  { %v1047_v21 = vadd.f32 %v1046_v15, %v2900_v17  ;;  %1571 = vmatprep.mubr.bf16.mxu0 %v1178_v23  ;;  %v1136_v28 = vmax.f32 %v1045_v18, 0.0 }
 0x242   :  { %v1048_v24 = vpop.f32.mrf.mxu1  ;;  %1572 = vmatmul.mubr.bf16.gmra.mxu0 %v1177_v14 }
 0x243   :  { %v1049_v25 = vadd.f32 %v1048_v24, %v2897_v16  ;;  %v1137_v13 = vmax.f32 %v1047_v21, 0.0 }
 0x244   :  { %v1052_v27 = vpop.f32.mrf.mxu1 }
 0x245   :  { %v1138_v29 = vmax.f32 %v1049_v25, 0.0  ;;  %v1179_v33 = vpack.c.bf16 %v1137_v13, %v1135_v30  ;;  %v1053_v37 = vadd.f32 %v1052_v27, %v2900_v17 }
 0x246   :  { %v1054_v31 = vpop.f32.mrf.mxu1 }
 0x247   :  { %v1180_v32 = vpack.c.bf16 %v1138_v29, %v1136_v28  ;;  %v1055_v35 = vadd.f32 %v1054_v31, %v2897_v16  ;;  %v1139_v44 = vmax.f32 %v1053_v37, 0.0 }
 0x248   :  { %v1056_v34 = vpop.f32.mrf.mxu1 }
 0x249   :  { %v1057_v36 = vadd.f32 %v1056_v34, %v2900_v17  ;;  %1581 = vmatprep.mubr.bf16.mxu0 %v1180_v32  ;;  %v1140_v42 = vmax.f32 %v1055_v35, 0.0 }
 0x24a   :  { %v1058_v38 = vpop.f32.mrf.mxu1  ;;  %1582 = vmatmul.mubr.bf16.gmra.mxu0 %v1179_v33 }
 0x24b   :  { %v1059_v39 = vadd.f32 %v1058_v38, %v2897_v16  ;;  %v1141_v40 = vmax.f32 %v1057_v36, 0.0 }
 0x24c   :  { %v1062_v41 = vpop.f32.mrf.mxu1 }
 0x24d   :  { %v1142_v43 = vmax.f32 %v1059_v39, 0.0  ;;  %v1181_v47 = vpack.c.bf16 %v1141_v40, %v1139_v44  ;;  %v1063_v51 = vadd.f32 %v1062_v41, %v2900_v17 }
 0x24e   :  { %v1064_v45 = vpop.f32.mrf.mxu1 }
 0x24f   :  { %v1182_v46 = vpack.c.bf16 %v1142_v43, %v1140_v42  ;;  %v1065_v49 = vadd.f32 %v1064_v45, %v2897_v16  ;;  %v1143_v57 = vmax.f32 %v1063_v51, 0.0 }
 0x250   :  { %v1066_v48 = vpop.f32.mrf.mxu1 }
 0x251   :  { %v1067_v50 = vadd.f32 %v1066_v48, %v2900_v17  ;;  %1591 = vmatprep.mubr.bf16.mxu0 %v1182_v46  ;;  %v1144_v55 = vmax.f32 %v1065_v49, 0.0  ;;  %v3020_v17 = vrot.slane %v1217_v60, %v2734_v20 }
 0x252   :  { %v1068_v52 = vpop.f32.mrf.mxu1  ;;  %1592 = vmatmul.mubr.bf16.gmra.mxu0 %v1181_v47 }
 0x253   :  { %v1069_v53 = vadd.f32 %v1068_v52, %v2897_v16  ;;  %v1145_v54 = vmax.f32 %v1067_v50, 0.0 }
 0x255   :  { %v1146_v56 = vmax.f32 %v1069_v53, 0.0  ;;  %v1183_v59 = vpack.c.bf16 %v1145_v54, %v1143_v57 }
 0x257   :  { %v1184_v58 = vpack.c.bf16 %v1146_v56, %v1144_v55 }
 0x259   :  { %1601 = vmatprep.mubr.bf16.mxu0 %v1184_v58 }
 0x25a   :  { %1602 = vmatmul.mubr.bf16.gmra.mxu0 %v1183_v59 }
 0x28a   :  { %v1423_v61 = vpop.f32.mrf.mxu0 }
 0x28b   :  { %v1424_v3 = vadd.f32 %v1423_v61, %v3020_v17 }
 0x28c   :  { %v1425_v16 = vpop.f32.mrf.mxu0 }
 0x28d   :  { %v1426_v1 = vadd.f32 %v1425_v16, %v3017_v62  ;;  %v1612_v19 = vmax.f32 %v1424_v3, 0.0 }
 0x28e   :  { %v1427_v63 = vpop.f32.mrf.mxu0 }
 0x28f   :  { %v1428_v2 = vadd.f32 %v1427_v63, %v3020_v17  ;;  %v1613_v8 = vmax.f32 %v1426_v1, 0.0 }
 0x290   :  { %v1429_v4 = vpop.f32.mrf.mxu0 }
 0x291   :  { %v1430_v5 = vadd.f32 %v1429_v4, %v3017_v62  ;;  %v1614_v6 = vmax.f32 %v1428_v2, 0.0 }
 0x292   :  { %v1433_v7 = vpop.f32.mrf.mxu0 }
 0x293   :  { %v1615_v9 = vmax.f32 %v1430_v5, 0.0  ;;  %v1688_v20 = vpack.c.bf16 %v1614_v6, %v1612_v19  ;;  %v1434_v23 = vadd.f32 %v1433_v7, %v3020_v17 }
 0x294   :  { %v1435_v10 = vpop.f32.mrf.mxu0 }
 0x295   :  { %v1689_v11 = vpack.c.bf16 %v1615_v9, %v1613_v8  ;;  %v1436_v12 = vadd.f32 %v1435_v10, %v3017_v62  ;;  %v1616_v25 = vmax.f32 %v1434_v23, 0.0 }
 0x296   :  { %v1437_v0 = vpop.f32.mrf.mxu0 }
 0x297   :  { %v1438_v26 = vadd.f32 %v1437_v0, %v3020_v17  ;;  %1893 = vmatprep.mubr.bf16.mxu0 %v1689_v11  ;;  %v1617_v22 = vmax.f32 %v1436_v12, 0.0 }
 0x298   :  { %v1439_v14 = vpop.f32.mrf.mxu0  ;;  %1894 = vmatmul.mubr.bf16.vlgmr.msra.gmra.mxu0 %v1688_v20 }
 0x299   :  { %v1440_v15 = vadd.f32 %v1439_v14, %v3017_v62  ;;  %v1618_v18 = vmax.f32 %v1438_v26, 0.0 }
 0x29a   :  { %v1443_v21 = vpop.f32.mrf.mxu0 }
 0x29b   :  { %v1619_v24 = vmax.f32 %v1440_v15, 0.0  ;;  %v1690_v28 = vpack.c.bf16 %v1618_v18, %v1616_v25  ;;  %v1444_v32 = vadd.f32 %v1443_v21, %v3020_v17 }
 0x29c   :  { %v1445_v13 = vpop.f32.mrf.mxu0 }
 0x29d   :  { %v1691_v27 = vpack.c.bf16 %v1619_v24, %v1617_v22  ;;  %v1446_v30 = vadd.f32 %v1445_v13, %v3017_v62  ;;  %v1620_v39 = vmax.f32 %v1444_v32, 0.0 }
 0x29e   :  { %v1447_v29 = vpop.f32.mrf.mxu0 }
 0x29f   :  { %v1448_v31 = vadd.f32 %v1447_v29, %v3020_v17  ;;  %1901 = vmatprep.mubr.bf16.mxu0 %v1691_v27  ;;  %v1621_v37 = vmax.f32 %v1446_v30, 0.0 }
 0x2a0   :  { %v1449_v33 = vpop.f32.mrf.mxu0  ;;  %1902 = vmatmul.mubr.bf16.gmra.mxu0 %v1690_v28 }
 0x2a1   :  { %v1450_v34 = vadd.f32 %v1449_v33, %v3017_v62  ;;  %v1622_v35 = vmax.f32 %v1448_v31, 0.0 }
 0x2a2   :  { %v1453_v36 = vpop.f32.mrf.mxu0 }
 0x2a3   :  { %v1623_v38 = vmax.f32 %v1450_v34, 0.0  ;;  %v1692_v42 = vpack.c.bf16 %v1622_v35, %v1620_v39  ;;  %v1454_v46 = vadd.f32 %v1453_v36, %v3020_v17 }
 0x2a4   :  { %v1455_v40 = vpop.f32.mrf.mxu0 }
 0x2a5   :  { %v1693_v41 = vpack.c.bf16 %v1623_v38, %v1621_v37  ;;  %v1456_v44 = vadd.f32 %v1455_v40, %v3017_v62  ;;  %v1624_v53 = vmax.f32 %v1454_v46, 0.0 }
 0x2a6   :  { %v1457_v43 = vpop.f32.mrf.mxu0 }
 0x2a7   :  { %v1458_v45 = vadd.f32 %v1457_v43, %v3020_v17  ;;  %1909 = vmatprep.mubr.bf16.mxu1 %v1693_v41  ;;  %v1625_v51 = vmax.f32 %v1456_v44, 0.0 }
 0x2a8   :  { %v1459_v47 = vpop.f32.mrf.mxu0  ;;  %1910 = vmatmul.mubr.bf16.vlgmr.msra.gmra.mxu1 %v1692_v42 }
 0x2a9   :  { %v1460_v48 = vadd.f32 %v1459_v47, %v3017_v62  ;;  %v1626_v49 = vmax.f32 %v1458_v45, 0.0 }
 0x2aa   :  { %v1463_v50 = vpop.f32.mrf.mxu0 }
 0x2ab   :  { %v1627_v52 = vmax.f32 %v1460_v48, 0.0  ;;  %v1694_v56 = vpack.c.bf16 %v1626_v49, %v1624_v53  ;;  %v1464_v60 = vadd.f32 %v1463_v50, %v3020_v17 }
 0x2ac   :  { %v1465_v54 = vpop.f32.mrf.mxu0 }
 0x2ad   :  { %v1695_v55 = vpack.c.bf16 %v1627_v52, %v1625_v51  ;;  %v1466_v58 = vadd.f32 %v1465_v54, %v3017_v62  ;;  %v1628_v4 = vmax.f32 %v1464_v60, 0.0 }
 0x2ae   :  { %v1467_v57 = vpop.f32.mrf.mxu0 }
 0x2af   :  { %v1468_v59 = vadd.f32 %v1467_v57, %v3020_v17  ;;  %1917 = vmatprep.mubr.bf16.mxu1 %v1695_v55  ;;  %v1629_v2 = vmax.f32 %v1466_v58, 0.0 }
 0x2b0   :  { %v1469_v61 = vpop.f32.mrf.mxu0  ;;  %1918 = vmatmul.mubr.bf16.gmra.mxu1 %v1694_v56 }
 0x2b1   :  { %v1470_v16 = vadd.f32 %v1469_v61, %v3017_v62  ;;  %v1630_v63 = vmax.f32 %v1468_v59, 0.0 }
 0x2b2   :  { %v1473_v1 = vpop.f32.mrf.mxu0 }
 0x2b3   :  { %v1631_v3 = vmax.f32 %v1470_v16, 0.0  ;;  %v1696_v7 = vpack.c.bf16 %v1630_v63, %v1628_v4  ;;  %v1474_v10 = vadd.f32 %v1473_v1, %v3020_v17 }
 0x2b4   :  { %v1475_v5 = vpop.f32.mrf.mxu0 }
 0x2b5   :  { %v1697_v6 = vpack.c.bf16 %v1631_v3, %v1629_v2  ;;  %v1476_v9 = vadd.f32 %v1475_v5, %v3017_v62  ;;  %v1632_v14 = vmax.f32 %v1474_v10, 0.0 }
 0x2b6   :  { %v1477_v8 = vpop.f32.mrf.mxu0 }
 0x2b7   :  { %v1478_v19 = vadd.f32 %v1477_v8, %v3020_v17  ;;  %1925 = vmatprep.mubr.bf16.mxu1 %v1697_v6  ;;  %v1633_v26 = vmax.f32 %v1476_v9, 0.0 }
 0x2b8   :  { %v1479_v11 = vpop.f32.mrf.mxu0  ;;  %1926 = vmatmul.mubr.bf16.gmra.mxu1 %v1696_v7 }
 0x2b9   :  { %v1480_v20 = vadd.f32 %v1479_v11, %v3017_v62  ;;  %v1634_v0 = vmax.f32 %v1478_v19, 0.0 }
 0x2ba   :  { %v1483_v12 = vpop.f32.mrf.mxu0 }
 0x2bb   :  { %v1635_v23 = vmax.f32 %v1480_v20, 0.0  ;;  %v1698_v21 = vpack.c.bf16 %v1634_v0, %v1632_v14  ;;  %v1484_v13 = vadd.f32 %v1483_v12, %v3020_v17 }
 0x2bc   :  { %v1485_v15 = vpop.f32.mrf.mxu0 }
 0x2bd   :  { %v1699_v18 = vpack.c.bf16 %v1635_v23, %v1633_v26  ;;  %v1486_v24 = vadd.f32 %v1485_v15, %v3017_v62  ;;  %v1636_v33 = vmax.f32 %v1484_v13, 0.0 }
 0x2be   :  { %v1487_v22 = vpop.f32.mrf.mxu0 }
 0x2bf   :  { %v1488_v25 = vadd.f32 %v1487_v22, %v3020_v17  ;;  %1933 = vmatprep.mubr.bf16.mxu1 %v1699_v18  ;;  %v1637_v31 = vmax.f32 %v1486_v24, 0.0 }
 0x2c0   :  { %v1489_v27 = vpop.f32.mrf.mxu0  ;;  %1934 = vmatmul.mubr.bf16.gmra.mxu1 %v1698_v21 }
 0x2c1   :  { %v1490_v28 = vadd.f32 %v1489_v27, %v3017_v62  ;;  %v1638_v29 = vmax.f32 %v1488_v25, 0.0 }
 0x2c2   :  { %v1493_v30 = vpop.f32.mrf.mxu0 }
 0x2c3   :  { %v1639_v32 = vmax.f32 %v1490_v28, 0.0  ;;  %v1700_v36 = vpack.c.bf16 %v1638_v29, %v1636_v33  ;;  %v1494_v40 = vadd.f32 %v1493_v30, %v3020_v17 }
 0x2c4   :  { %v1495_v34 = vpop.f32.mrf.mxu0 }
 0x2c5   :  { %v1701_v35 = vpack.c.bf16 %v1639_v32, %v1637_v31  ;;  %v1496_v38 = vadd.f32 %v1495_v34, %v3017_v62  ;;  %v1640_v47 = vmax.f32 %v1494_v40, 0.0 }
 0x2c6   :  { %v1497_v37 = vpop.f32.mrf.mxu0 }
 0x2c7   :  { %v1498_v39 = vadd.f32 %v1497_v37, %v3020_v17  ;;  %1941 = vmatprep.mubr.bf16.mxu1 %v1701_v35  ;;  %v1641_v45 = vmax.f32 %v1496_v38, 0.0 }
 0x2c8   :  { %v1499_v41 = vpop.f32.mrf.mxu0  ;;  %1942 = vmatmul.mubr.bf16.gmra.mxu1 %v1700_v36 }
 0x2c9   :  { %v1500_v42 = vadd.f32 %v1499_v41, %v3017_v62  ;;  %v1642_v43 = vmax.f32 %v1498_v39, 0.0 }
 0x2ca   :  { %v1503_v44 = vpop.f32.mrf.mxu0 }
 0x2cb   :  { %v1643_v46 = vmax.f32 %v1500_v42, 0.0  ;;  %v1702_v50 = vpack.c.bf16 %v1642_v43, %v1640_v47  ;;  %v1504_v54 = vadd.f32 %v1503_v44, %v3020_v17 }
 0x2cc   :  { %v1505_v48 = vpop.f32.mrf.mxu0 }
 0x2cd   :  { %v1703_v49 = vpack.c.bf16 %v1643_v46, %v1641_v45  ;;  %v1506_v52 = vadd.f32 %v1505_v48, %v3017_v62  ;;  %v1644_v61 = vmax.f32 %v1504_v54, 0.0 }
 0x2ce   :  { %v1507_v51 = vpop.f32.mrf.mxu0 }
 0x2cf   :  { %v1508_v53 = vadd.f32 %v1507_v51, %v3020_v17  ;;  %1949 = vmatprep.mubr.bf16.mxu1 %v1703_v49  ;;  %v1645_v59 = vmax.f32 %v1506_v52, 0.0 }
 0x2d0   :  { %v1509_v55 = vpop.f32.mrf.mxu0  ;;  %1950 = vmatmul.mubr.bf16.gmra.mxu1 %v1702_v50 }
 0x2d1   :  { %v1510_v56 = vadd.f32 %v1509_v55, %v3017_v62  ;;  %v1646_v57 = vmax.f32 %v1508_v53, 0.0 }
 0x2d2   :  { %v1513_v58 = vpop.f32.mrf.mxu0 }
 0x2d3   :  { %v1647_v60 = vmax.f32 %v1510_v56, 0.0  ;;  %v1704_v1 = vpack.c.bf16 %v1646_v57, %v1644_v61  ;;  %v1514_v5 = vadd.f32 %v1513_v58, %v3020_v17 }
 0x2d4   :  { %v1515_v16 = vpop.f32.mrf.mxu0 }
 0x2d5   :  { %v1705_v63 = vpack.c.bf16 %v1647_v60, %v1645_v59  ;;  %v1516_v3 = vadd.f32 %v1515_v16, %v3017_v62  ;;  %v1648_v11 = vmax.f32 %v1514_v5, 0.0 }
 0x2d6   :  { %v1517_v2 = vpop.f32.mrf.mxu0 }
 0x2d7   :  { %v1518_v4 = vadd.f32 %v1517_v2, %v3020_v17  ;;  %1957 = vmatprep.mubr.bf16.mxu1 %v1705_v63  ;;  %v1649_v19 = vmax.f32 %v1516_v3, 0.0 }
 0x2d8   :  { %v1519_v6 = vpop.f32.mrf.mxu0  ;;  %1958 = vmatmul.mubr.bf16.gmra.mxu1 %v1704_v1 }
 0x2d9   :  { %v1520_v7 = vadd.f32 %v1519_v6, %v3017_v62  ;;  %v1650_v8 = vmax.f32 %v1518_v4, 0.0 }
 0x2da   :  { %v1523_v9 = vpop.f32.mrf.mxu0 }
 0x2db   :  { %v1651_v10 = vmax.f32 %v1520_v7, 0.0  ;;  %v1706_v12 = vpack.c.bf16 %v1650_v8, %v1648_v11  ;;  %v1524_v15 = vadd.f32 %v1523_v9, %v3020_v17 }
 0x2dc   :  { %v1525_v20 = vpop.f32.mrf.mxu0 }
 0x2dd   :  { %v1707_v0 = vpack.c.bf16 %v1651_v10, %v1649_v19  ;;  %v1526_v23 = vadd.f32 %v1525_v20, %v3017_v62  ;;  %v1652_v27 = vmax.f32 %v1524_v15, 0.0 }
 0x2de   :  { %v1527_v26 = vpop.f32.mrf.mxu0 }
 0x2df   :  { %v1528_v14 = vadd.f32 %v1527_v26, %v3020_v17  ;;  %1965 = vmatprep.mubr.bf16.mxu1 %v1707_v0  ;;  %v1653_v25 = vmax.f32 %v1526_v23, 0.0 }
 0x2e0   :  { %v1529_v18 = vpop.f32.mrf.mxu0  ;;  %1966 = vmatmul.mubr.bf16.gmra.mxu1 %v1706_v12 }
 0x2e1   :  { %v1530_v21 = vadd.f32 %v1529_v18, %v3017_v62  ;;  %v1654_v22 = vmax.f32 %v1528_v14, 0.0 }
 0x2e2   :  { %v1533_v24 = vpop.f32.mrf.mxu0 }
 0x2e3   :  { %v1655_v13 = vmax.f32 %v1530_v21, 0.0  ;;  %v1708_v30 = vpack.c.bf16 %v1654_v22, %v1652_v27  ;;  %v1534_v34 = vadd.f32 %v1533_v24, %v3020_v17 }
 0x2e4   :  { %v1535_v28 = vpop.f32.mrf.mxu0 }
 0x2e5   :  { %v1709_v29 = vpack.c.bf16 %v1655_v13, %v1653_v25  ;;  %v1536_v32 = vadd.f32 %v1535_v28, %v3017_v62  ;;  %v1656_v41 = vmax.f32 %v1534_v34, 0.0 }
 0x2e6   :  { %v1537_v31 = vpop.f32.mrf.mxu0 }
 0x2e7   :  { %v1538_v33 = vadd.f32 %v1537_v31, %v3020_v17  ;;  %1973 = vmatprep.mubr.bf16.mxu1 %v1709_v29  ;;  %v1657_v39 = vmax.f32 %v1536_v32, 0.0 }
 0x2e8   :  { %v1539_v35 = vpop.f32.mrf.mxu0  ;;  %1974 = vmatmul.mubr.bf16.gmra.mxu1 %v1708_v30 }
 0x2e9   :  { %v1540_v36 = vadd.f32 %v1539_v35, %v3017_v62  ;;  %v1658_v37 = vmax.f32 %v1538_v33, 0.0 }
 0x2ea   :  { %v1543_v38 = vpop.f32.mrf.mxu0 }
 0x2eb   :  { %v1659_v40 = vmax.f32 %v1540_v36, 0.0  ;;  %v1710_v44 = vpack.c.bf16 %v1658_v37, %v1656_v41  ;;  %v1544_v48 = vadd.f32 %v1543_v38, %v3020_v17 }
 0x2ec   :  { %v1545_v42 = vpop.f32.mrf.mxu0 }
 0x2ed   :  { %v1711_v43 = vpack.c.bf16 %v1659_v40, %v1657_v39  ;;  %v1546_v46 = vadd.f32 %v1545_v42, %v3017_v62  ;;  %v1660_v55 = vmax.f32 %v1544_v48, 0.0 }
 0x2ee   :  { %v1547_v45 = vpop.f32.mrf.mxu0 }
 0x2ef   :  { %v1548_v47 = vadd.f32 %v1547_v45, %v3020_v17  ;;  %1981 = vmatprep.mubr.bf16.mxu1 %v1711_v43  ;;  %v1661_v53 = vmax.f32 %v1546_v46, 0.0 }
 0x2f0   :  { %v1549_v49 = vpop.f32.mrf.mxu0  ;;  %1982 = vmatmul.mubr.bf16.gmra.mxu1 %v1710_v44 }
 0x2f1   :  { %v1550_v50 = vadd.f32 %v1549_v49, %v3017_v62  ;;  %v1662_v51 = vmax.f32 %v1548_v47, 0.0 }
 0x2f2   :  { %v1553_v52 = vpop.f32.mrf.mxu0 }
 0x2f3   :  { %v1663_v54 = vmax.f32 %v1550_v50, 0.0  ;;  %v1712_v58 = vpack.c.bf16 %v1662_v51, %v1660_v55  ;;  %v1554_v16 = vadd.f32 %v1553_v52, %v3020_v17 }
 0x2f4   :  { %v1555_v56 = vpop.f32.mrf.mxu0 }
 0x2f5   :  { %v1713_v57 = vpack.c.bf16 %v1663_v54, %v1661_v53  ;;  %v1556_v60 = vadd.f32 %v1555_v56, %v3017_v62  ;;  %v1664_v6 = vmax.f32 %v1554_v16, 0.0 }
 0x2f6   :  { %v1557_v59 = vpop.f32.mrf.mxu0 }
 0x2f7   :  { %v1558_v61 = vadd.f32 %v1557_v59, %v3020_v17  ;;  %1989 = vmatprep.mubr.bf16.mxu1 %v1713_v57  ;;  %v1665_v4 = vmax.f32 %v1556_v60, 0.0 }
 0x2f8   :  { %v1559_v63 = vpop.f32.mrf.mxu0  ;;  %1990 = vmatmul.mubr.bf16.gmra.mxu1 %v1712_v58 }
 0x2f9   :  { %v1560_v1 = vadd.f32 %v1559_v63, %v3017_v62  ;;  %v1666_v2 = vmax.f32 %v1558_v61, 0.0 }
 0x2fa   :  { %v1563_v3 = vpop.f32.mrf.mxu0 }
 0x2fb   :  { %v1667_v5 = vmax.f32 %v1560_v1, 0.0  ;;  %v1714_v9 = vpack.c.bf16 %v1666_v2, %v1664_v6  ;;  %v1564_v20 = vadd.f32 %v1563_v3, %v3020_v17 }
 0x2fc   :  { %v1565_v7 = vpop.f32.mrf.mxu0 }
 0x2fd   :  { %v1715_v8 = vpack.c.bf16 %v1667_v5, %v1665_v4  ;;  %v1566_v10 = vadd.f32 %v1565_v7, %v3017_v62  ;;  %v1668_v18 = vmax.f32 %v1564_v20, 0.0 }
 0x2fe   :  { %v1567_v19 = vpop.f32.mrf.mxu0 }
 0x2ff   :  { %v1568_v11 = vadd.f32 %v1567_v19, %v3020_v17  ;;  %1997 = vmatprep.mubr.bf16.mxu1 %v1715_v8  ;;  %v1669_v14 = vmax.f32 %v1566_v10, 0.0 }
 0x300   :  { %v1569_v0 = vpop.f32.mrf.mxu0  ;;  %1998 = vmatmul.mubr.bf16.gmra.mxu1 %v1714_v9 }
 0x301   :  { %v1570_v12 = vadd.f32 %v1569_v0, %v3017_v62  ;;  %v1670_v26 = vmax.f32 %v1568_v11, 0.0 }
 0x302   :  { %v1573_v23 = vpop.f32.mrf.mxu0 }
 0x303   :  { %v1671_v15 = vmax.f32 %v1570_v12, 0.0  ;;  %v1716_v24 = vpack.c.bf16 %v1670_v26, %v1668_v18  ;;  %v1574_v28 = vadd.f32 %v1573_v23, %v3020_v17  ;;  %v3101_v26 = vld [vmem:[%s3263_s8] ss:$0 sm:$0xff] }
 0x304   :  { %v1575_v21 = vpop.f32.mrf.mxu0 }
 0x305   :  { %v1717_v22 = vpack.c.bf16 %v1671_v15, %v1669_v14  ;;  %v1576_v13 = vadd.f32 %v1575_v21, %v3017_v62  ;;  %v1672_v35 = vmax.f32 %v1574_v28, 0.0 }
 0x306   :  { %v1577_v25 = vpop.f32.mrf.mxu0 }
 0x307   :  { %v1578_v27 = vadd.f32 %v1577_v25, %v3020_v17  ;;  %2005 = vmatprep.mubr.bf16.mxu1 %v1717_v22  ;;  %v1673_v33 = vmax.f32 %v1576_v13, 0.0 }
 0x308   :  { %v1579_v29 = vpop.f32.mrf.mxu0  ;;  %2006 = vmatmul.mubr.bf16.gmra.mxu1 %v1716_v24 }
 0x309   :  { %v1580_v30 = vadd.f32 %v1579_v29, %v3017_v62  ;;  %v1674_v31 = vmax.f32 %v1578_v27, 0.0 }
 0x30a   :  { %v1583_v32 = vpop.f32.mrf.mxu0 }
 0x30b   :  { %v1675_v34 = vmax.f32 %v1580_v30, 0.0  ;;  %v1718_v38 = vpack.c.bf16 %v1674_v31, %v1672_v35  ;;  %v1584_v42 = vadd.f32 %v1583_v32, %v3020_v17 }
 0x30c   :  { %v1585_v36 = vpop.f32.mrf.mxu0 }
 0x30d   :  { %v1719_v37 = vpack.c.bf16 %v1675_v34, %v1673_v33  ;;  %v1586_v40 = vadd.f32 %v1585_v36, %v3017_v62  ;;  %v1676_v49 = vmax.f32 %v1584_v42, 0.0 }
 0x30e   :  { %v1587_v39 = vpop.f32.mrf.mxu0 }
 0x30f   :  { %v1588_v41 = vadd.f32 %v1587_v39, %v3020_v17  ;;  %2013 = vmatprep.mubr.bf16.mxu1 %v1719_v37  ;;  %v1677_v47 = vmax.f32 %v1586_v40, 0.0 }
 0x310   :  { %v1589_v43 = vpop.f32.mrf.mxu0  ;;  %2014 = vmatmul.mubr.bf16.gmra.mxu1 %v1718_v38 }
 0x311   :  { %v1590_v44 = vadd.f32 %v1589_v43, %v3017_v62  ;;  %v1678_v45 = vmax.f32 %v1588_v41, 0.0 }
 0x312   :  { %v1593_v46 = vpop.f32.mrf.mxu0 }
 0x313   :  { %v1679_v48 = vmax.f32 %v1590_v44, 0.0  ;;  %v1720_v52 = vpack.c.bf16 %v1678_v45, %v1676_v49  ;;  %v1594_v56 = vadd.f32 %v1593_v46, %v3020_v17 }
 0x314   :  { %v1595_v50 = vpop.f32.mrf.mxu0 }
 0x315   :  { %v1721_v51 = vpack.c.bf16 %v1679_v48, %v1677_v47  ;;  %v1596_v54 = vadd.f32 %v1595_v50, %v3017_v62  ;;  %v1680_v63 = vmax.f32 %v1594_v56, 0.0 }
 0x316   :  { %v1597_v53 = vpop.f32.mrf.mxu0 }
 0x317   :  { %v1598_v55 = vadd.f32 %v1597_v53, %v3020_v17  ;;  %2021 = vmatprep.mubr.bf16.mxu1 %v1721_v51  ;;  %v1681_v61 = vmax.f32 %v1596_v54, 0.0 }
 0x318   :  { %v1599_v57 = vpop.f32.mrf.mxu0  ;;  %2022 = vmatmul.mubr.bf16.gmra.mxu1 %v1720_v52 }
 0x319   :  { %v1600_v58 = vadd.f32 %v1599_v57, %v3017_v62  ;;  %v1682_v59 = vmax.f32 %v1598_v55, 0.0 }
 0x31a   :  { %v1603_v60 = vpop.f32.mrf.mxu0 }
 0x31b   :  { %v1683_v16 = vmax.f32 %v1600_v58, 0.0  ;;  %v1722_v3 = vpack.c.bf16 %v1682_v59, %v1680_v63  ;;  %v1604_v7 = vadd.f32 %v1603_v60, %v3020_v17 }
 0x31c   :  { %v1605_v1 = vpop.f32.mrf.mxu0 }
 0x31d   :  { %v1723_v2 = vpack.c.bf16 %v1683_v16, %v1681_v61  ;;  %v1606_v5 = vadd.f32 %v1605_v1, %v3017_v62  ;;  %v1684_v20 = vmax.f32 %v1604_v7, 0.0 }
 0x31e   :  { %v1607_v4 = vpop.f32.mrf.mxu0 }
 0x31f   :  { %v1608_v6 = vadd.f32 %v1607_v4, %v3020_v17  ;;  %2029 = vmatprep.mubr.bf16.mxu1 %v1723_v2  ;;  %v1685_v10 = vmax.f32 %v1606_v5, 0.0 }
 0x320   :  { %v1609_v8 = vpop.f32.mrf.mxu0  ;;  %2030 = vmatmul.mubr.bf16.gmra.mxu1 %v1722_v3 }
 0x321   :  { %v1610_v9 = vadd.f32 %v1609_v8, %v3017_v62  ;;  %v1686_v19 = vmax.f32 %v1608_v6, 0.0 }
 0x323   :  { %v1687_v11 = vmax.f32 %v1610_v9, 0.0  ;;  %v1724_v12 = vpack.c.bf16 %v1686_v19, %v1684_v20 }
 0x325   :  { %v1725_v0 = vpack.c.bf16 %v1687_v11, %v1685_v10 }
 0x327   :  { %2037 = vmatprep.mubr.bf16.mxu1 %v1725_v0 }
 0x328   :  { %2038 = vmatmul.mubr.bf16.gmra.mxu1 %v1724_v12 }
 0x358   :  { %v1895_v23 = vpop.f32.mrf.mxu0 }
 0x359   :  { %v1896_v17 = vadd.f32 %v3101_v26, %v1895_v23 }
 0x35a   :  { %v1897_v14 = vpop.f32.mrf.mxu0 }
 0x35b   :  { %2046 = vst [vmem:[%s3264_s9] sm:$0xff] %v1896_v17 }
 0x35c   :  { %v1898_v62 = vpop.f32.mrf.mxu0 }
 0x35d   :  { %v1899_v15 = vadd.f32 %v3101_v26, %v1898_v62 }
 0x35e   :  { %v1900_v18 = vpop.f32.mrf.mxu0 }
 0x35f   :  { %2047 = vst [vmem:[%s3264_s9 + $0x8] sm:$0xff] %v1899_v15 }
 0x360   :  { %v1903_v21 = vpop.f32.mrf.mxu0 }
 0x361   :  { %v1904_v22 = vadd.f32 %v3101_v26, %v1903_v21 }
 0x362   :  { %v1905_v24 = vpop.f32.mrf.mxu0 }
 0x363   :  { %2048 = vst [vmem:[%s3264_s9 + $0x10] sm:$0xff] %v1904_v22 }
 0x364   :  { %v1906_v25 = vpop.f32.mrf.mxu0 }
 0x365   :  { %v1907_v13 = vadd.f32 %v3101_v26, %v1906_v25 }
 0x366   :  { %v1908_v27 = vpop.f32.mrf.mxu0 }
 0x367   :  { %2049 = vst [vmem:[%s3264_s9 + $0x18] sm:$0xff] %v1907_v13 }
 0x368   :  { %v1911_v28 = vpop.f32.mrf.mxu1 }
 0x369   :  { %v1912_v29 = vadd.f32 %v3101_v26, %v1911_v28 }
 0x36a   :  { %v1913_v30 = vpop.f32.mrf.mxu1 }
 0x36b   :  { %2050 = vst [vmem:[%s3264_s9 + $0x20] sm:$0xff] %v1912_v29 }
 0x36c   :  { %v1914_v31 = vpop.f32.mrf.mxu1 }
 0x36d   :  { %v1915_v32 = vadd.f32 %v3101_v26, %v1914_v31 }
 0x36e   :  { %v1916_v33 = vpop.f32.mrf.mxu1 }
 0x36f   :  { %2051 = vst [vmem:[%s3264_s9 + $0x28] sm:$0xff] %v1915_v32 }
 0x370   :  { %v1919_v34 = vpop.f32.mrf.mxu1 }
 0x371   :  { %v1920_v35 = vadd.f32 %v3101_v26, %v1919_v34 }
 0x372   :  { %v1921_v36 = vpop.f32.mrf.mxu1 }
 0x373   :  { %2052 = vst [vmem:[%s3264_s9 + $0x30] sm:$0xff] %v1920_v35 }
 0x374   :  { %v1922_v37 = vpop.f32.mrf.mxu1 }
 0x375   :  { %v1923_v38 = vadd.f32 %v3101_v26, %v1922_v37 }
 0x376   :  { %v1924_v39 = vpop.f32.mrf.mxu1 }
 0x377   :  { %2053 = vst [vmem:[%s3264_s9 + $0x38] sm:$0xff] %v1923_v38 }
 0x378   :  { %v1927_v40 = vpop.f32.mrf.mxu1 }
 0x379   :  { %v1928_v41 = vadd.f32 %v3101_v26, %v1927_v40 }
 0x37a   :  { %v1929_v42 = vpop.f32.mrf.mxu1 }
 0x37b   :  { %2054 = vst [vmem:[%s3264_s9 + $0x40] sm:$0xff] %v1928_v41 }
 0x37c   :  { %v1930_v43 = vpop.f32.mrf.mxu1 }
 0x37d   :  { %v1931_v44 = vadd.f32 %v3101_v26, %v1930_v43 }
 0x37e   :  { %v1932_v45 = vpop.f32.mrf.mxu1 }
 0x37f   :  { %2055 = vst [vmem:[%s3264_s9 + $0x48] sm:$0xff] %v1931_v44 }
 0x380   :  { %v1935_v46 = vpop.f32.mrf.mxu1 }
 0x381   :  { %v1936_v47 = vadd.f32 %v3101_v26, %v1935_v46 }
 0x382   :  { %v1937_v48 = vpop.f32.mrf.mxu1 }
 0x383   :  { %2056 = vst [vmem:[%s3264_s9 + $0x50] sm:$0xff] %v1936_v47 }
 0x384   :  { %v1938_v49 = vpop.f32.mrf.mxu1 }
 0x385   :  { %v1939_v50 = vadd.f32 %v3101_v26, %v1938_v49 }
 0x386   :  { %v1940_v51 = vpop.f32.mrf.mxu1 }
 0x387   :  { %2057 = vst [vmem:[%s3264_s9 + $0x58] sm:$0xff] %v1939_v50 }
 0x388   :  { %v1943_v52 = vpop.f32.mrf.mxu1 }
 0x389   :  { %v1944_v53 = vadd.f32 %v3101_v26, %v1943_v52 }
 0x38a   :  { %v1945_v54 = vpop.f32.mrf.mxu1 }
 0x38b   :  { %2058 = vst [vmem:[%s3264_s9 + $0x60] sm:$0xff] %v1944_v53 }
 0x38c   :  { %v1946_v55 = vpop.f32.mrf.mxu1 }
 0x38d   :  { %v1947_v56 = vadd.f32 %v3101_v26, %v1946_v55 }
 0x38e   :  { %v1948_v57 = vpop.f32.mrf.mxu1 }
 0x38f   :  { %2059 = vst [vmem:[%s3264_s9 + $0x68] sm:$0xff] %v1947_v56 }
 0x390   :  { %v1951_v58 = vpop.f32.mrf.mxu1 }
 0x391   :  { %v1952_v59 = vadd.f32 %v3101_v26, %v1951_v58 }
 0x392   :  { %v1953_v60 = vpop.f32.mrf.mxu1 }
 0x393   :  { %2060 = vst [vmem:[%s3264_s9 + $0x70] sm:$0xff] %v1952_v59 }
 0x394   :  { %v1954_v61 = vpop.f32.mrf.mxu1 }
 0x395   :  { %v1955_v16 = vadd.f32 %v3101_v26, %v1954_v61 }
 0x396   :  { %v1956_v63 = vpop.f32.mrf.mxu1 }
 0x397   :  { %2061 = vst [vmem:[%s3264_s9 + $0x78] sm:$0xff] %v1955_v16 }
 0x398   :  { %v1959_v1 = vpop.f32.mrf.mxu1 }
 0x399   :  { %v1960_v2 = vadd.f32 %v3101_v26, %v1959_v1 }
 0x39a   :  { %v1961_v3 = vpop.f32.mrf.mxu1 }
 0x39b   :  { %2062 = vst [vmem:[%s3264_s9 + $0x80] sm:$0xff] %v1960_v2 }
 0x39c   :  { %v1962_v4 = vpop.f32.mrf.mxu1 }
 0x39d   :  { %v1963_v5 = vadd.f32 %v3101_v26, %v1962_v4 }
 0x39e   :  { %v1964_v6 = vpop.f32.mrf.mxu1 }
 0x39f   :  { %2063 = vst [vmem:[%s3264_s9 + $0x88] sm:$0xff] %v1963_v5 }
 0x3a0   :  { %v1967_v7 = vpop.f32.mrf.mxu1 }
 0x3a1   :  { %v1968_v8 = vadd.f32 %v3101_v26, %v1967_v7 }
 0x3a2   :  { %v1969_v9 = vpop.f32.mrf.mxu1 }
 0x3a3   :  { %2064 = vst [vmem:[%s3264_s9 + $0x90] sm:$0xff] %v1968_v8 }
 0x3a4   :  { %v1970_v19 = vpop.f32.mrf.mxu1 }
 0x3a5   :  { %v1971_v10 = vadd.f32 %v3101_v26, %v1970_v19 }
 0x3a6   :  { %v1972_v11 = vpop.f32.mrf.mxu1 }
 0x3a7   :  { %2065 = vst [vmem:[%s3264_s9 + $0x98] sm:$0xff] %v1971_v10 }
 0x3a8   :  { %v1975_v20 = vpop.f32.mrf.mxu1 }
 0x3a9   :  { %v1976_v0 = vadd.f32 %v3101_v26, %v1975_v20 }
 0x3aa   :  { %v1977_v12 = vpop.f32.mrf.mxu1 }
 0x3ab   :  { %2066 = vst [vmem:[%s3264_s9 + $0xa0] sm:$0xff] %v1976_v0 }
 0x3ac   :  { %v1978_v23 = vpop.f32.mrf.mxu1 }
 0x3ad   :  { %v1979_v17 = vadd.f32 %v3101_v26, %v1978_v23 }
 0x3ae   :  { %v1980_v14 = vpop.f32.mrf.mxu1 }
 0x3af   :  { %2067 = vst [vmem:[%s3264_s9 + $0xa8] sm:$0xff] %v1979_v17 }
 0x3b0   :  { %v1983_v62 = vpop.f32.mrf.mxu1 }
 0x3b1   :  { %v1984_v15 = vadd.f32 %v3101_v26, %v1983_v62 }
 0x3b2   :  { %v1985_v18 = vpop.f32.mrf.mxu1 }
 0x3b3   :  { %2068 = vst [vmem:[%s3264_s9 + $0xb0] sm:$0xff] %v1984_v15 }
 0x3b4   :  { %v1986_v21 = vpop.f32.mrf.mxu1 }
 0x3b5   :  { %v1987_v22 = vadd.f32 %v3101_v26, %v1986_v21 }
 0x3b6   :  { %v1988_v24 = vpop.f32.mrf.mxu1 }
 0x3b7   :  { %2069 = vst [vmem:[%s3264_s9 + $0xb8] sm:$0xff] %v1987_v22 }
 0x3b8   :  { %v1991_v25 = vpop.f32.mrf.mxu1 }
 0x3b9   :  { %v1992_v13 = vadd.f32 %v3101_v26, %v1991_v25 }
 0x3ba   :  { %v1993_v27 = vpop.f32.mrf.mxu1 }
 0x3bb   :  { %2070 = vst [vmem:[%s3264_s9 + $0xc0] sm:$0xff] %v1992_v13 }
 0x3bc   :  { %v1994_v28 = vpop.f32.mrf.mxu1 }
 0x3bd   :  { %v1995_v29 = vadd.f32 %v3101_v26, %v1994_v28 }
 0x3be   :  { %v1996_v30 = vpop.f32.mrf.mxu1 }
 0x3bf   :  { %2071 = vst [vmem:[%s3264_s9 + $0xc8] sm:$0xff] %v1995_v29 }
 0x3c0   :  { %v1999_v31 = vpop.f32.mrf.mxu1 }
 0x3c1   :  { %v2000_v32 = vadd.f32 %v3101_v26, %v1999_v31 }
 0x3c2   :  { %v2001_v33 = vpop.f32.mrf.mxu1 }
 0x3c3   :  { %2072 = vst [vmem:[%s3264_s9 + $0xd0] sm:$0xff] %v2000_v32 }
 0x3c4   :  { %v2002_v34 = vpop.f32.mrf.mxu1 }
 0x3c5   :  { %v2003_v35 = vadd.f32 %v3101_v26, %v2002_v34 }
 0x3c6   :  { %v2004_v36 = vpop.f32.mrf.mxu1 }
 0x3c7   :  { %2073 = vst [vmem:[%s3264_s9 + $0xd8] sm:$0xff] %v2003_v35 }
 0x3c8   :  { %v2007_v37 = vpop.f32.mrf.mxu1 }
 0x3c9   :  { %v2008_v38 = vadd.f32 %v3101_v26, %v2007_v37 }
 0x3ca   :  { %v2009_v39 = vpop.f32.mrf.mxu1 }
 0x3cb   :  { %2074 = vst [vmem:[%s3264_s9 + $0xe0] sm:$0xff] %v2008_v38 }
 0x3cc   :  { %v2010_v40 = vpop.f32.mrf.mxu1 }
 0x3cd   :  { %v2011_v41 = vadd.f32 %v3101_v26, %v2010_v40 }
 0x3ce   :  { %v2012_v42 = vpop.f32.mrf.mxu1 }
 0x3cf   :  { %2075 = vst [vmem:[%s3264_s9 + $0xe8] sm:$0xff] %v2011_v41 }
 0x3d0   :  { %v2015_v43 = vpop.f32.mrf.mxu1 }
 0x3d1   :  { %v2016_v44 = vadd.f32 %v3101_v26, %v2015_v43 }
 0x3d2   :  { %v2017_v45 = vpop.f32.mrf.mxu1 }
 0x3d3   :  { %2076 = vst [vmem:[%s3264_s9 + $0xf0] sm:$0xff] %v2016_v44 }
 0x3d4   :  { %v2018_v46 = vpop.f32.mrf.mxu1 }
 0x3d5   :  { %v2019_v47 = vadd.f32 %v3101_v26, %v2018_v46 }
 0x3d6   :  { %v2020_v48 = vpop.f32.mrf.mxu1 }
 0x3d7   :  { %2077 = vst [vmem:[%s3264_s9 + $0xf8] sm:$0xff] %v2019_v47 }
 0x3d8   :  { %v2023_v49 = vpop.f32.mrf.mxu1 }
 0x3d9   :  { %v2024_v50 = vadd.f32 %v3101_v26, %v2023_v49 }
 0x3da   :  { %v2025_v51 = vpop.f32.mrf.mxu1 }
 0x3db   :  { %2078 = vst [vmem:[%s3264_s9 + $0x100] sm:$0xff] %v2024_v50 }
 0x3dc   :  { %v2026_v52 = vpop.f32.mrf.mxu1 }
 0x3dd   :  { %v2027_v53 = vadd.f32 %v3101_v26, %v2026_v52 }
 0x3de   :  { %v2028_v54 = vpop.f32.mrf.mxu1 }
 0x3df   :  { %2079 = vst [vmem:[%s3264_s9 + $0x108] sm:$0xff] %v2027_v53 }
 0x3e0   :  { %v2031_v55 = vpop.f32.mrf.mxu1 }
 0x3e1   :  { %v2032_v56 = vadd.f32 %v3101_v26, %v2031_v55 }
 0x3e2   :  { %v2033_v57 = vpop.f32.mrf.mxu1 }
 0x3e3   :  { %2080 = vst [vmem:[%s3264_s9 + $0x110] sm:$0xff] %v2032_v56 }
 0x3e4   :  { %v2034_v58 = vpop.f32.mrf.mxu1 }
 0x3e5   :  { %v2035_v59 = vadd.f32 %v3101_v26, %v2034_v58 }
 0x3e6   :  { %v2036_v60 = vpop.f32.mrf.mxu1 }
 0x3e7   :  { %2081 = vst [vmem:[%s3264_s9 + $0x118] sm:$0xff] %v2035_v59 }
 0x3e8   :  { %v2039_v61 = vpop.f32.mrf.mxu1 }
 0x3e9   :  { %v2040_v16 = vadd.f32 %v3101_v26, %v2039_v61 }
 0x3ea   :  { %v2041_v63 = vpop.f32.mrf.mxu1 }
 0x3eb   :  { %2082 = vst [vmem:[%s3264_s9 + $0x120] sm:$0xff] %v2040_v16 }
 0x3ec   :  { %v2042_v1 = vpop.f32.mrf.mxu1 }
 0x3ed   :  { %v2043_v2 = vadd.f32 %v3101_v26, %v2042_v1 }
 0x3ee   :  { %v2044_v3 = vpop.f32.mrf.mxu1 }
 0x3ef   :  { %2083 = vst [vmem:[%s3264_s9 + $0x128] sm:$0xff] %v2043_v2 }
 0x3f0   :  { %2088 = vsyncpa [#allocation3], 1 }

</bundles_post_ra>
